<compile_context>
chip_gen: v6e
topology: v6e:2x2x1
jax: 0.10.0
libtpu: 0.0.40
codegen_flags: <defaults>
</compile_context>

<pallas_src>
import functools
import math

import jax
import jax.numpy as jnp
from jax.experimental import pallas as pl
from jax.experimental.pallas import tpu as pltpu


def _round_up(x, m):
    return ((x + m - 1) // m) * m


def _space_to_depth(x, s):
    """(N,H,W,C) -> (N, ceil(H/s), ceil(W/s), s*s*C), zero-padding H/W to multiples of s.

    Output channel block (ri*s + rj) holds the original channels of input pixel
    (s*i + ri, s*j + rj), so a stride-s conv tap becomes a contiguous channel slice.
    """
    if s == 1:
        return x
    n, h, w, c = x.shape
    hp, wp = _round_up(h, s), _round_up(w, s)
    if (hp, wp) != (h, w):
        x = jnp.pad(x, ((0, 0), (0, hp - h), (0, wp - w), (0, 0)))
    x = x.reshape(n, hp // s, s, wp // s, s, c)
    x = jnp.transpose(x, (0, 1, 3, 2, 4, 5))
    return x.reshape(n, hp // s, wp // s, s * s * c)


# ----------------------------- Pallas kernel -----------------------------

def _conv_im2col_mm_kernel(*refs, n_src, kh, kw, stride, oh, ow, src_cpads,
                           apply_relu, has_bias):
    """Implicit-GEMM conv (+ folded channel concat) for one batch element.

    refs = (*src_refs, w_ref[, b_ref], o_ref)
      src_refs[s]: (H', W', C'_s) bf16  full-spatial block (space-to-depth'd if stride>1)
      w_ref      : (KH*KW*sum(Cpad_s), Cout_pad) bf16   K order = (di, dj, source, channel)
      b_ref      : (1, Cout_pad) f32                    (only present if has_bias)
      o_ref      : (OH*OW, Cout_pad) bf16
    """
    src_refs = refs[:n_src]
    w = refs[n_src][...]                                   # (K, Cout_pad) bf16
    b = refs[n_src + 1][...] if has_bias else None         # (1, Cout_pad) f32
    o_ref = refs[-1]

    # Load each source block from VMEM once; all subsequent gathers are static
    # slices of the in-register value (no repeated / strided ref loads).
    xs = [r[...] for r in src_refs]

    pieces = []
    if stride == 1:
        # Fold the source channel-concat once, then kh*kw wide contiguous slices.
        xcat = xs[0] if n_src == 1 else jnp.concatenate(xs, axis=-1)
        for di in range(kh):
            for dj in range(kw):
                pieces.append(xcat[di:di + oh, dj:dj + ow, :])
    else:
        # Sources were space-to-depth'd outside: tap (di,dj) of source s lives at
        # spatial offset (di//s, dj//s) and channel offset ((di%s)*s + dj%s)*Cpad_s.
        s = stride
        for di in range(kh):
            qi, ri = divmod(di, s)
            for dj in range(kw):
                qj, rj = divmod(dj, s)
                for x, cpad in zip(xs, src_cpads):
                    coff = (ri * s + rj) * cpad             # lane-aligned (cpad mult. of 8/128)
                    pieces.append(x[qi:qi + oh, qj:qj + ow, coff:coff + cpad])

    patch = jnp.concatenate(pieces, axis=-1) if len(pieces) > 1 else pieces[0]
    patch = patch.reshape(oh * ow, patch.shape[-1])         # (M, K) bf16, one im2col block

    acc = jnp.dot(patch, w, preferred_element_type=jnp.float32)   # single MXU matmul
    if has_bias:
        acc = acc + b
    if apply_relu:
        acc = jnp.maximum(acc, 0.0)
    o_ref[...] = acc.astype(o_ref.dtype)                    # one lane-dense store per image


def conv2d_pallas_nhwc(sources, w_mat, bias, *, kh, kw, stride, cout_pad, apply_relu):
    """Conv2d (padding=0) over channel-concat of `sources`, NHWC in / NHWC out.

    sources : list of (N, H, W, Cpad_s) bf16 arrays (same N, H, W)
    w_mat   : (KH*KW*sum(Cpad_s), Cout_pad) bf16 flattened weight
    bias    : (1, Cout_pad) f32 or None
    returns : (N, OH, OW, Cout_pad) bf16
    """
    n, h, w_sp, _ = sources[0].shape
    oh = (h - kh) // stride + 1
    ow = (w_sp - kw) // stride + 1
    src_cpads = tuple(int(s.shape[-1]) for s in sources)

    # stride>1: XLA-side space-to-depth so every in-kernel gather is contiguous.
    srcs = [_space_to_depth(s, stride) for s in sources]

    kernel = functools.partial(
        _conv_im2col_mm_kernel, n_src=len(srcs), kh=kh, kw=kw, stride=stride,
        oh=oh, ow=ow, src_cpads=src_cpads, apply_relu=apply_relu,
        has_bias=bias is not None)

    in_specs = [pl.BlockSpec((None,) + tuple(s.shape[1:]), lambda b_: (b_, 0, 0, 0))
                for s in srcs]
    in_specs.append(pl.BlockSpec(w_mat.shape, lambda b_: (0, 0)))
    args = list(srcs) + [w_mat]
    if bias is not None:
        in_specs.append(pl.BlockSpec(bias.shape, lambda b_: (0, 0)))
        args.append(bias)

    out = pl.pallas_call(
        kernel,
        out_shape=jax.ShapeDtypeStruct((n, oh * ow, cout_pad), jnp.bfloat16),
        grid_spec=pltpu.PrefetchScalarGridSpec(
            num_scalar_prefetch=0,
            grid=(n,),
            in_specs=in_specs,
            out_specs=pl.BlockSpec((None, oh * ow, cout_pad), lambda b_: (b_, 0, 0)),
        ),
        compiler_params=pltpu.CompilerParams(
            dimension_semantics=("parallel",),      # batch axis feeds both v7x TCs
            vmem_limit_bytes=32 * 1024 * 1024,      # safe on v5e/v6e/v7x at these sizes
        ),
    )(*args)
    return out.reshape(n, oh, ow, cout_pad)


# ----------------------------- IRNetHead -----------------------------

class IRNetHeadPallas:
    """JAX/Pallas re-implementation of IRNetHead's path-aggregation forward."""

    def __init__(self, input_channels, path_aggregation, key):
        # input_channels: dict feature_key -> num channels
        self.path_aggregation = path_aggregation

        real_c = dict(input_channels)
        # raw inputs: pad channels to a multiple of 8 (bf16 lane-friendliness);
        # produced features: padded to a multiple of 128 (lane-dense stores).
        pad_c = {k: max(_round_up(c, 8), 8) for k, c in input_channels.items()}
        self.input_pad_c = dict(pad_c)

        self.convs = []
        for path in path_aggregation:
            in_keys = path['input_key']
            cout = path['out_channel']
            ks = path['kernel']
            use_bias = path['out_key'] != 'last'   # 'last' conv: bias=False, no norm, no ReLU
            cin_real = [real_c[k] for k in in_keys]
            cin_pad = [pad_c[k] for k in in_keys]
            cin_total = sum(cin_real)

            key, wkey = jax.random.split(key)
            # deterministic c2_xavier_fill-style init (kaiming_uniform, fan_in), bias = 0
            fan_in = cin_total * ks * ks
            bound = math.sqrt(3.0 / fan_in)
            w = jax.random.uniform(wkey, (cout, cin_total, ks, ks),
                                   jnp.float32, -bound, bound)

            cout_pad = max(_round_up(cout, 128), 128)
            # Flatten to (K, Cout_pad) with K order (di, dj, source, padded-channel),
            # zero-padding each source's Cin slice and the Cout axis.
            chunks = []
            off = 0
            for cr, cp in zip(cin_real, cin_pad):
                chunk = w[:, off:off + cr, :, :]                  # (cout, cr, kh, kw)
                off += cr
                chunk = jnp.transpose(chunk, (2, 3, 1, 0))        # (kh, kw, cr, cout)
                chunk = jnp.pad(chunk, ((0, 0), (0, 0),
                                        (0, cp - cr), (0, cout_pad - cout)))
                chunks.append(chunk)
            w_mat = jnp.concatenate(chunks, axis=2)               # (kh, kw, P_total, cout_pad)
            w_mat = w_mat.reshape(ks * ks * sum(cin_pad), cout_pad).astype(jnp.bfloat16)
            b_mat = jnp.zeros((1, cout_pad), jnp.float32) if use_bias else None

            self.convs.append(dict(w=w_mat, b=b_mat, kh=ks, kw=ks,
                                   stride=path['stride'], cout=cout, cout_pad=cout_pad,
                                   relu=use_bias, in_keys=in_keys))
            real_c[path['out_key']] = cout
            pad_c[path['out_key']] = cout_pad

        self.real_c = real_c

    def __call__(self, features):
        # One-time NCHW f32 -> NHWC bf16 conversion (+ channel pad) of the raw inputs;
        # everything downstream stays NHWC bf16 until the final output.
        store = {}
        for k, x in features.items():
            x = jnp.transpose(x, (0, 2, 3, 1)).astype(jnp.bfloat16)
            cp = self.input_pad_c[k]
            c = x.shape[-1]
            if cp != c:
                x = jnp.pad(x, ((0, 0), (0, 0), (0, 0), (0, cp - c)))
            store[k] = x

        for path, conv in zip(self.path_aggregation, self.convs):
            sample = path.get('sample', [1] * len(conv['in_keys']))
            srcs = []
            for k, u in zip(conv['in_keys'], sample):
                f = store[k]
                if u != 1:
                    # nearest-neighbor upsample (F.interpolate 'nearest') on the small source.
                    f = jnp.repeat(jnp.repeat(f, u, axis=1), u, axis=2)
                srcs.append(f)
            store[path['out_key']] = conv2d_pallas_nhwc(
                srcs, conv['w'], conv['b'],
                kh=conv['kh'], kw=conv['kw'], stride=conv['stride'],
                cout_pad=conv['cout_pad'], apply_relu=conv['relu'])

        out = store['last'][..., : self.real_c['last']]           # drop the lane padding
        return jnp.transpose(out, (0, 3, 1, 2)).astype(jnp.float32)  # back to NCHW f32


# ----------------------------- demo -----------------------------

if __name__ == "__main__":
    key = jax.random.PRNGKey(0)
    k_p3, k_p4, k_head = jax.random.split(key, 3)

    # small feature pyramid inputs (NCHW), consistent with a detectron2-style head
    features = {
        "p3": jax.random.normal(k_p3, (2, 4, 16, 16), jnp.float32),
        "p4": jax.random.normal(k_p4, (2, 4, 8, 8), jnp.float32),
    }
    input_channels = {"p3": 4, "p4": 4}

    path_aggregation = [
        # upsample p4 x2, concat with p3 -> 3x3/s1 conv + bias + ReLU
        {"input_key": ["p3", "p4"], "sample": [1, 2], "out_channel": 8,
         "kernel": 3, "stride": 1, "out_key": "m3"},
        # m3 -> 3x3/s2 conv, no bias, no ReLU (out_key == 'last')
        {"input_key": ["m3"], "sample": [1], "out_channel": 8,
         "kernel": 3, "stride": 2, "out_key": "last"},
    ]

    head = IRNetHeadPallas(input_channels, path_aggregation, k_head)
    out = head(features)
    out = jax.block_until_ready(out)
    assert out.shape == (2, 8, 6, 6), out.shape
    print("KERNEL_OK")
</pallas_src>

<mosaic_0001>
module attributes {stable_mosaic.version = 11 : i64} {
  func.func @_conv_im2col_mm_kernel(%arg0: i32, %arg1: memref<1x16x16x8xbf16, #tpu.memory_space<vmem>>, %arg2: memref<1x16x16x8xbf16, #tpu.memory_space<vmem>>, %arg3: memref<144x128xbf16, #tpu.memory_space<vmem>>, %arg4: memref<1x128xf32, #tpu.memory_space<vmem>>, %arg5: memref<1x196x128xbf16, #tpu.memory_space<vmem>>) attributes {dimension_semantics = [#tpu.dimension_semantics<parallel>], iteration_bounds = array<i64: 2>, scalar_prefetch = 0 : i64, scratch_operands = 0 : i64, tpu.core_type = #tpu.core_type<tc>, window_params = [{transform_indices = @transform_0, window_bounds = array<i64: 1, 16, 16, 8>}, {transform_indices = @transform_1, window_bounds = array<i64: 1, 16, 16, 8>}, {pipeline_mode = #tpu.pipeline_mode<synchronous>, transform_indices = @transform_2, window_bounds = array<i64: 144, 128>}, {pipeline_mode = #tpu.pipeline_mode<synchronous>, transform_indices = @transform_3, window_bounds = array<i64: 1, 128>}, {transform_indices = @transform_4, window_bounds = array<i64: 1, 196, 128>}]} {
    %c0 = arith.constant 0 : index
    %c0_0 = arith.constant 0 : index
    %0 = vector.load %arg3[%c0, %c0_0] : memref<144x128xbf16, #tpu.memory_space<vmem>>, vector<144x128xbf16>
    %c0_1 = arith.constant 0 : index
    %c0_2 = arith.constant 0 : index
    %1 = vector.load %arg4[%c0_1, %c0_2] : memref<1x128xf32, #tpu.memory_space<vmem>>, vector<1x128xf32>
    %c0_3 = arith.constant 0 : index
    %c0_4 = arith.constant 0 : index
    %c0_5 = arith.constant 0 : index
    %c0_6 = arith.constant 0 : index
    %2 = vector.load %arg1[%c0_3, %c0_4, %c0_5, %c0_6] : memref<1x16x16x8xbf16, #tpu.memory_space<vmem>>, vector<1x16x16x8xbf16>
    %3 = vector.shape_cast %2 : vector<1x16x16x8xbf16> to vector<16x16x8xbf16>
    %c0_7 = arith.constant 0 : index
    %c0_8 = arith.constant 0 : index
    %c0_9 = arith.constant 0 : index
    %c0_10 = arith.constant 0 : index
    %4 = vector.load %arg2[%c0_7, %c0_8, %c0_9, %c0_10] : memref<1x16x16x8xbf16, #tpu.memory_space<vmem>>, vector<1x16x16x8xbf16>
    %5 = vector.shape_cast %4 : vector<1x16x16x8xbf16> to vector<16x16x8xbf16>
    %6 = tpu.concatenate %3, %5 in 2 : vector<16x16x8xbf16>, vector<16x16x8xbf16> -> vector<16x16x16xbf16>
    %7 = vector.extract_strided_slice %6 {offsets = [0, 0, 0], sizes = [14, 14, 16], strides = [1, 1, 1]} : vector<16x16x16xbf16> to vector<14x14x16xbf16>
    %8 = vector.extract_strided_slice %6 {offsets = [0, 1, 0], sizes = [14, 14, 16], strides = [1, 1, 1]} : vector<16x16x16xbf16> to vector<14x14x16xbf16>
    %9 = vector.extract_strided_slice %6 {offsets = [0, 2, 0], sizes = [14, 14, 16], strides = [1, 1, 1]} : vector<16x16x16xbf16> to vector<14x14x16xbf16>
    %10 = vector.extract_strided_slice %6 {offsets = [1, 0, 0], sizes = [14, 14, 16], strides = [1, 1, 1]} : vector<16x16x16xbf16> to vector<14x14x16xbf16>
    %11 = vector.extract_strided_slice %6 {offsets = [1, 1, 0], sizes = [14, 14, 16], strides = [1, 1, 1]} : vector<16x16x16xbf16> to vector<14x14x16xbf16>
    %12 = vector.extract_strided_slice %6 {offsets = [1, 2, 0], sizes = [14, 14, 16], strides = [1, 1, 1]} : vector<16x16x16xbf16> to vector<14x14x16xbf16>
    %13 = vector.extract_strided_slice %6 {offsets = [2, 0, 0], sizes = [14, 14, 16], strides = [1, 1, 1]} : vector<16x16x16xbf16> to vector<14x14x16xbf16>
    %14 = vector.extract_strided_slice %6 {offsets = [2, 1, 0], sizes = [14, 14, 16], strides = [1, 1, 1]} : vector<16x16x16xbf16> to vector<14x14x16xbf16>
    %15 = vector.extract_strided_slice %6 {offsets = [2, 2, 0], sizes = [14, 14, 16], strides = [1, 1, 1]} : vector<16x16x16xbf16> to vector<14x14x16xbf16>
    %16 = tpu.concatenate %7, %8, %9, %10, %11, %12, %13, %14, %15 in 2 : vector<14x14x16xbf16>, vector<14x14x16xbf16>, vector<14x14x16xbf16>, vector<14x14x16xbf16>, vector<14x14x16xbf16>, vector<14x14x16xbf16>, vector<14x14x16xbf16>, vector<14x14x16xbf16>, vector<14x14x16xbf16> -> vector<14x14x144xbf16>
    %17 = vector.shape_cast %16 : vector<14x14x144xbf16> to vector<196x144xbf16>
    %cst = arith.constant dense<0.000000e+00> : vector<196x128xf32>
    %18 = tpu.matmul %17, %0, %cst {dimension_numbers = #tpu.dot_dimension_numbers<[1], [0], [0], [1], [0, 0, 1, 1], [], []>} : vector<196x144xbf16>, vector<144x128xbf16>, vector<196x128xf32> -> vector<196x128xf32>
    %19 = vector.broadcast %1 : vector<1x128xf32> to vector<196x128xf32>
    %20 = arith.addf %18, %19 : vector<196x128xf32>
    %cst_11 = arith.constant 0.000000e+00 : f32
    %21 = vector.broadcast %cst_11 : f32 to vector<196x128xf32>
    %22 = arith.maximumf %20, %21 : vector<196x128xf32>
    %23 = arith.truncf %22 : vector<196x128xf32> to vector<196x128xbf16>
    %c0_12 = arith.constant 0 : index
    %c0_13 = arith.constant 0 : index
    %c0_14 = arith.constant 0 : index
    %24 = vector.load %arg5[%c0_12, %c0_13, %c0_14] : memref<1x196x128xbf16, #tpu.memory_space<vmem>>, vector<1x196x128xbf16>
    %25 = vector.shape_cast %24 : vector<1x196x128xbf16> to vector<196x128xbf16>
    %26 = vector.shape_cast %23 : vector<196x128xbf16> to vector<1x196x128xbf16>
    tpu.vector_store %arg5[%c0_12, %c0_13, %c0_14], %26 {strides = array<i32>} : memref<1x196x128xbf16, #tpu.memory_space<vmem>>, vector<1x196x128xbf16>,
    return
  }
  func.func @transform_0(%arg0: i32) -> (i32, i32, i32, i32) {
    %c0_i32 = arith.constant 0 : i32
    %c0_i32_0 = arith.constant 0 : i32
    %c0_i32_1 = arith.constant 0 : i32
    %c0_i32_2 = arith.constant 0 : i32
    return %arg0, %c0_i32, %c0_i32_0, %c0_i32_1 : i32, i32, i32, i32
  }
  func.func @transform_1(%arg0: i32) -> (i32, i32, i32, i32) {
    %c0_i32 = arith.constant 0 : i32
    %c0_i32_0 = arith.constant 0 : i32
    %c0_i32_1 = arith.constant 0 : i32
    %c0_i32_2 = arith.constant 0 : i32
    return %arg0, %c0_i32, %c0_i32_0, %c0_i32_1 : i32, i32, i32, i32
  }
  func.func @transform_2(%arg0: i32) -> (i32, i32) {
    %c0_i32 = arith.constant 0 : i32
    %c0_i32_0 = arith.constant 0 : i32
    %c0_i32_1 = arith.constant 0 : i32
    return %c0_i32, %c0_i32_0 : i32, i32
  }
  func.func @transform_3(%arg0: i32) -> (i32, i32) {
    %c0_i32 = arith.constant 0 : i32
    %c0_i32_0 = arith.constant 0 : i32
    %c0_i32_1 = arith.constant 0 : i32
    return %c0_i32, %c0_i32_0 : i32, i32
  }
  func.func @transform_4(%arg0: i32) -> (i32, i32, i32) {
    %c0_i32 = arith.constant 0 : i32
    %c0_i32_0 = arith.constant 0 : i32
    %c0_i32_1 = arith.constant 0 : i32
    return %arg0, %c0_i32, %c0_i32_0 : i32, i32, i32
  }
}

</mosaic_0001>

<bundles_post_ra>
// kernel: tpu_custom_call.1
= control target key start
LH: loop header
LB: loop body
LE: loop exit
PB: predicated region body
PF: predicated region fallthrough
CT: control target
= control target key end

     0   :  { %s3369_s15 = smov 0   ;;  %s4366_s0 = inlined_call_operand.vmem [shape: bf16[2,16,16,8], index: 0, kind: input, shape index: {}]   ;;  %s4367_s1 = inlined_call_operand.vmem [shape: bf16[2,16,16,8], index: 1, kind: input, shape index: {}]   ;;  %s4368_s2 = inlined_call_operand.vmem [shape: bf16[144,128], index: 2, kind: input, shape index: {}]   ;;  %s4369_s3 = inlined_call_operand.vmem [shape: f32[1,128], index: 3, kind: input, shape index: {}]   ;;  %s4370_s4 = inlined_call_operand.vmem [shape: bf16[2,196,128], index: 4, kind: output, shape index: {}]  }
   0x1 LB: > { %s3051_s16 = sadd.s32 4294967295, %s3332_s15   ;;  %p3055_p0 = scmp.ge.s32.totalorder %s3332_s15, 1  ;;  %s3332_s15 = sphi %s3369_s15, %s14_s15  }
   0x2   : > { %p172_p1 = scmp.lt.s32.totalorder %s3332_s15, 3 }
   0x4   : > { %p173_p2 = pnand %p3055_p0, %p172_p1 }
   0x6   : > { %176 = sbr.rel (%p173_p2) target bundleno = 670 (0x29e), region = 36 }
   0xb   : > { %p203_p3 = scmp.lt.s32.totalorder %s3051_s16, 1  ;;  %s3334_s21 = smov 8   ;;  %vm494_vm0 = vcmask 64512   ;;  %v3317_v63 = vld [vmem:[%s4368_s2 + $0x38] sm:$0xff]   ;;  %vm867_vm1 = vcmask 130048   ;;  %vm896_vm2 = vcmask 261120  }
   0xc   : > { %s3335_s25 = smov 48   ;;  %s3336_s26 = smov 96   ;;  %vm925_vm3 = vcmask 392192   ;;  %vm954_vm4 = vcmask 523264   ;;  %vm983_vm5 = vcmask 654336   ;;  %vm1012_vm6 = vcmask 785408  }
   0xd   : > { %s4385_s16 = smov (!%p203_p3, %s3051_s16), 1  ;;  %s3337_s27 = smov 32   ;;  %vm1041_vm7 = vcmask 916480  }
   0xe   : > { %s3150_s17 = sshll.u32 %s4385_s16, 7  ;;  %s3338_s28 = smov 80  }
   0xf   : > { %s3383_s20 = scalar_lea.vmem %s4367_s1, %s3150_s17  ;;  %s3404_s24 = scalar_lea.vmem %s4366_s0, %s3150_s17 }
  0x10   : > { %v3285_v0 = vld [vmem:[%s3383_s20 + $0x10] sm:$0xff]   ;;  %v3286_v1 = vld [vmem:[%s3383_s20] sm:$0xff]   ;;  %v3287_v2 = vld [vmem:[%s3383_s20 + $0x18] sm:$0xff]   ;;  %s3339_s5 = smov 16   ;;  %s3341_s10 = smov 64  }
  0x11   : > { %466 = vrot.lane.b32.xlu1 %v3285_v0, %s3334_s21  ;;  %462 = vrot.lane.b32.xlu0 %v3286_v1, %s3334_s21  ;;  %v3288_v3 = vld [vmem:[%s3383_s20 + $0x8] sm:$0xff]   ;;  %v3289_v4 = vld [vmem:[%s3383_s20 + $0x20] sm:$0xff]   ;;  %v3340_v1 = vmov 0   ;;  %s3342_s13 = smov 112  }
  0x12   : > { %v3290_v5 = vld [vmem:[%s3383_s20 + $0x40] sm:$0xff]   ;;  %v3291_v6 = vld [vmem:[%s3383_s20 + $0x50] sm:$0xff]   ;;  %v3292_v7 = vld [vmem:[%s3383_s20 + $0x48] sm:$0xff]   ;;  %2697 = vmatprep.subr.bf16.mxu0 %v3340_v1  ;;  %3248 = vmatprep.subr.bf16.mxu1 %v3340_v1 }
  0x13   : > { %v3293_v8 = vld [vmem:[%s3383_s20 + $0x28] sm:$0xff]   ;;  %v3294_v9 = vld [vmem:[%s3383_s20 + $0x58] sm:$0xff]   ;;  %v3296_v10 = vld [vmem:[%s3383_s20 + $0x30] sm:$0xff]   ;;  %2698 = vmatpush1.bf16.msra.mxu0 %v3317_v63  ;;  %3257 = vmatpush1.bf16.msra.mxu1 %v3317_v63 }
  0x14   : > { %v3295_v11 = vld [vmem:[%s3383_s20 + $0x60] sm:$0xff]   ;;  %v3298_v12 = vld [vmem:[%s3383_s20 + $0x38] sm:$0xff]   ;;  %v3297_v13 = vld [vmem:[%s3383_s20 + $0x68] sm:$0xff]   ;;  %2699 = vmatprep.subr.bf16.mxu0 %v3340_v1  ;;  %3249 = vmatprep.subr.bf16.mxu1 %v3340_v1 }
  0x15   : > { %468 = vrot.lane.b32.xlu1 %v3287_v2, %s3334_s21  ;;  %464 = vrot.lane.b32.xlu0 %v3288_v3, %s3334_s21  ;;  %v3299_v14 = vld [vmem:[%s3383_s20 + $0x70] sm:$0xff]   ;;  %v3300_v15 = vld [vmem:[%s3383_s20 + $0x78] sm:$0xff]  }
  0x16   : > { %v3301_v16 = vld [vmem:[%s3404_s24 + $0x10] sm:$0xff]   ;;  %v3303_v20 = vld [vmem:[%s3404_s24 + $0x18] sm:$0xff]   ;;  %v3304_v21 = vld [vmem:[%s3404_s24 + $0x8] sm:$0xff]  }
  0x17   : > { %v3307_v28 = vld [vmem:[%s3404_s24 + $0x50] sm:$0xff]   ;;  %v3305_v29 = vld [vmem:[%s3404_s24 + $0x20] sm:$0xff]   ;;  %v3308_v33 = vld [vmem:[%s3404_s24 + $0x48] sm:$0xff]  }
  0x18   : > { %v3309_v35 = vld [vmem:[%s3404_s24 + $0x28] sm:$0xff]   ;;  %v3310_v39 = vld [vmem:[%s3404_s24 + $0x58] sm:$0xff]   ;;  %v3306_v43 = vld [vmem:[%s3404_s24 + $0x40] sm:$0xff]  }
  0x19   : > { %470 = vrot.lane.b32.xlu1 %v3289_v4, %s3334_s21  ;;  %478 = vrot.lane.b32.xlu0 %v3290_v5, %s3334_s21  ;;  %v3302_v45 = vld [vmem:[%s3404_s24] sm:$0xff]  }
  0x1a   : > { %v3311_v46 = vld [vmem:[%s3404_s24 + $0x60] sm:$0xff]  }
  0x1d   : > { %482 = vrot.lane.b32.xlu1 %v3291_v6, %s3334_s21  ;;  %480 = vrot.lane.b32.xlu0 %v3292_v7, %s3334_s21  ;;  %v3318_v7 = vld [vmem:[%s4368_s2 + $0x30] sm:$0xff]  }
  0x1e   : > { %2700 = vmatpush1.bf16.msra.mxu0 %v3318_v7  ;;  %3258 = vmatpush1.bf16.msra.mxu1 %v3318_v7 }
  0x1f   : > { %2701 = vmatprep.subr.bf16.mxu0 %v3340_v1  ;;  %3250 = vmatprep.subr.bf16.mxu1 %v3340_v1 }
  0x21   : > { %472 = vrot.lane.b32.xlu1 %v3293_v8, %s3334_s21  ;;  %484 = vrot.lane.b32.xlu0 %v3294_v9, %s3334_s21 }
  0x25   : > { %474 = vrot.lane.b32.xlu1 %v3296_v10, %s3334_s21  ;;  %486 = vrot.lane.b32.xlu0 %v3295_v11, %s3334_s21 }
  0x29   : > { %476 = vrot.lane.b32.xlu1 %v3298_v12, %s3334_s21  ;;  %488 = vrot.lane.b32.xlu0 %v3297_v13, %s3334_s21  ;;  %v3319_v12 = vld [vmem:[%s4368_s2 + $0x28] sm:$0xff]  }
  0x2a   : > { %2702 = vmatpush1.bf16.msra.mxu0 %v3319_v12  ;;  %3259 = vmatpush1.bf16.msra.mxu1 %v3319_v12 }
  0x2b   : > { %2703 = vmatprep.subr.bf16.mxu0 %v3340_v1  ;;  %3251 = vmatprep.subr.bf16.mxu1 %v3340_v1 }
  0x2d   : > { %492 = vrot.lane.b32.xlu1 %v3300_v15, %s3334_s21  ;;  %490 = vrot.lane.b32.xlu0 %v3299_v14, %s3334_s21 }
  0x83   : > { %v467_v17 = vpop.permute.xlu1 %466  ;;  %v463_v19 = vpop.permute.xlu0 %462 }
  0x84   : > { %v3424_v18 = vsel %vm494_vm0, %v3301_v16, %v467_v17  ;;  %v3497_v50 = vsel %vm494_vm0, %v3302_v45, %v463_v19  ;;  %v3320_v17 = vld [vmem:[%s4368_s2 + $0x20] sm:$0xff]  }
  0x85   : > { %714 = vrot.lane.b32.xlu0 %v3424_v18, %s3335_s25  ;;  %v3482_v44 = vrot.slane %v3424_v18, 1  ;;  %v669_v53 = vrot.slane %v3497_v50, 1  ;;  %v545_v54 = vshll.u32 %v3497_v50, 16  ;;  %v543_v59 = vshrl.u32 %v3497_v50, 16  ;;  %2704 = vmatpush1.bf16.msra.mxu0 %v3320_v17 }
  0x86   : > { %v557_v62 = vshll.u32 %v3424_v18, 16  ;;  %v555_v3 = vshrl.u32 %v3424_v18, 16  ;;  %2705 = vmatprep.subr.bf16.mxu0 %v3340_v1  ;;  %3260 = vmatpush1.bf16.msra.mxu1 %v3320_v17 }
  0x87   : > { %v469_v22 = vpop.permute.xlu1 %468  ;;  %v465_v24 = vpop.permute.xlu0 %464  ;;  %v547_v57 = vrot.slane %v545_v54, 1  ;;  %3252 = vmatprep.subr.bf16.mxu1 %v3340_v1 }
  0x88   : > { %v3431_v23 = vsel %vm494_vm0, %v3303_v20, %v469_v22  ;;  %v3434_v25 = vsel %vm494_vm0, %v3304_v21, %v465_v24  ;;  %v559_v4 = vrot.slane %v557_v62, 1  ;;  %v3321_v24 = vld [vmem:[%s4368_s2 + $0x18] sm:$0xff]  }
  0x89   : > { %806 = vrot.lane.b32.xlu0 %v3431_v23, %s3336_s26  ;;  %712 = vrot.lane.b32.xlu1 %v3434_v25, %s3335_s25  ;;  %v670_v41 = vrot.slane %v3434_v25, 1  ;;  %v3507_v52 = vrot.slane %v3431_v23, 1  ;;  %v551_v58 = vshll.u32 %v3434_v25, 16  ;;  %v548_v60 = vor.u32 %v547_v57, %v543_v59 }
  0x8a   : > { %v549_v0 = vshrl.u32 %v3434_v25, 16  ;;  %v563_v5 = vshll.u32 %v3431_v23, 16  ;;  %v3555_v8 = vor.u32 %v559_v4, %v555_v3  ;;  %v561_v9 = vshrl.u32 %v3431_v23, 16  ;;  %2706 = vmatpush1.bf16.msra.mxu0 %v3321_v24  ;;  %3261 = vmatpush1.bf16.msra.mxu1 %v3321_v24 }
  0x8b   : > { %v471_v26 = vpop.permute.xlu1 %470  ;;  %v479_v27 = vpop.permute.xlu0 %478  ;;  %v553_v61 = vrot.slane %v551_v58, 1  ;;  %2707 = vmatprep.subr.bf16.mxu0 %v3340_v1  ;;  %3253 = vmatprep.subr.bf16.mxu1 %v3340_v1 }
  0x8c   : > { %v3450_v32 = vsel %vm494_vm0, %v3305_v29, %v471_v26  ;;  %v3489_v47 = vsel %vm494_vm0, %v3306_v43, %v479_v27  ;;  %v565_v10 = vrot.slane %v563_v5, 1  ;;  %v3325_v43 = vld [vmem:[%s4368_s2 + $0x40] sm:$0xff]  }
  0x8d   : > { %716 = vrot.lane.b32.xlu0 %v3431_v23, %s3335_s25  ;;  %804 = vrot.lane.b32.xlu1 %v3424_v18, %s3336_s26  ;;  %v3494_v49 = vrot.slane %v3489_v47, 1  ;;  %v3521_v56 = vrot.slane %v3450_v32, 1  ;;  %v3538_v2 = vor.u32 %v553_v61, %v549_v0  ;;  %v593_v11 = vshll.u32 %v3489_v47, 16 }
  0x8e   : > { %v3568_v13 = vor.u32 %v565_v10, %v561_v9  ;;  %v591_v14 = vshrl.u32 %v3489_v47, 16  ;;  %v569_v22 = vshll.u32 %v3450_v32, 16  ;;  %v567_v27 = vshrl.u32 %v3450_v32, 16 }
  0x8f   : > { %v483_v30 = vpop.permute.xlu1 %482  ;;  %v481_v34 = vpop.permute.xlu0 %480  ;;  %v595_v15 = vrot.slane %v593_v11, 1 }
  0x90   : > { %v3447_v31 = vsel %vm494_vm0, %v3307_v28, %v483_v30  ;;  %v3459_v37 = vsel %vm494_vm0, %v3308_v33, %v481_v34  ;;  %v571_v28 = vrot.slane %v569_v22, 1  ;;  %v3322_v30 = vld [vmem:[%s4368_s2 + $0x10] sm:$0xff]   ;;  %v3323_v34 = vld [vmem:[%s4368_s2 + $0x8] sm:$0xff]  }
  0x91   : > { %730 = vrot.lane.b32.xlu0 %v3447_v31, %s3335_s25  ;;  %808 = vrot.lane.b32.xlu1 %v3450_v32, %s3336_s26  ;;  %v3515_v55 = vrot.slane %v3447_v31, 1  ;;  %v3545_v6 = vrot.slane %v3459_v37, 1  ;;  %v599_v16 = vshll.u32 %v3459_v37, 16  ;;  %v3581_v19 = vor.u32 %v595_v15, %v591_v14 }
  0x92   : > { %v597_v20 = vshrl.u32 %v3459_v37, 16  ;;  %v572_v33 = vor.u32 %v571_v28, %v567_v27  ;;  %2708 = vmatpush1.bf16.msra.mxu0 %v3322_v30  ;;  %3262 = vmatpush1.bf16.msra.mxu1 %v3322_v30 }
  0x93   : > { %v473_v36 = vpop.permute.xlu1 %472  ;;  %v485_v40 = vpop.permute.xlu0 %484  ;;  %4376 = vst [vmem:[#allocation2_spill] sm:$0xff] %v3545_v6  ;;  %v601_v21 = vrot.slane %v599_v16, 1  ;;  %2709 = vmatprep.subr.bf16.mxu0 %v3340_v1  ;;  %3254 = vmatprep.subr.bf16.mxu1 %v3340_v1  ;;  %v3313_v16 = vld [vmem:[%s3404_s24 + $0x68] sm:$0xff]  }
  0x94   : > { %v3466_v38 = vsel %vm494_vm0, %v3309_v35, %v473_v36  ;;  %v3475_v42 = vsel %vm494_vm0, %v3310_v39, %v485_v40  ;;  %v605_v35 = vshll.u32 %v3447_v31, 16  ;;  %v3324_v36 = vld [vmem:[%s4368_s2] sm:$0xff]   ;;  %v603_v39 = vshrl.u32 %v3447_v31, 16 }
  0x95   : > { %820 = vrot.lane.b32.xlu0 %v3447_v31, %s3336_s26  ;;  %728 = vrot.lane.b32.xlu1 %v3459_v37, %s3335_s25  ;;  %v3594_v26 = vor.u32 %v601_v21, %v597_v20  ;;  %v3598_v29 = vrot.slane %v3475_v42, 1  ;;  %v573_v57 = vshrl.u32 %v3466_v38, 16  ;;  %v3659_v3 = vrot.slane %v3466_v38, 1  ;;  %v3314_v20 = vld [vmem:[%s3404_s24 + $0x38] sm:$0xff]  }
  0x96   : > { %2710 = vmatpush1.bf16.msra.mxu0 %v3323_v34  ;;  %3263 = vmatpush1.bf16.msra.mxu1 %v3323_v34  ;;  %v607_v40 = vrot.slane %v605_v35, 1 }
  0x97   : > { %v487_v48 = vpop.permute.xlu0 %486  ;;  %2711 = vmatprep.subr.bf16.mxu0 %v3340_v1  ;;  %3255 = vmatprep.subr.bf16.mxu1 %v3340_v1  ;;  %v475_v0 = vpop.permute.xlu1 %474 }
  0x98   : > { %v3500_v51 = vsel %vm494_vm0, %v3311_v46, %v487_v48  ;;  %v608_v45 = vor.u32 %v607_v40, %v603_v39  ;;  %v609_v46 = vshrl.u32 %v3475_v42, 16 }
  0x99   : > { %810 = vrot.lane.b32.xlu0 %v3466_v38, %s3336_s26  ;;  %718 = vrot.lane.b32.xlu1 %v3450_v32, %s3335_s25  ;;  %v615_v61 = vshrl.u32 %v3500_v51, 16  ;;  %v3707_v30 = vrot.slane %v3500_v51, 1 }
  0x9a   : > { %2712 = vmatpush1.bf16.msra.mxu0 %v3324_v36  ;;  %3264 = vmatpush1.bf16.msra.mxu1 %v3324_v36 }
  0x9b   : > { %2727 = vmatprep.subr.bf16.mxu0 %v3340_v1  ;;  %3256 = vmatprep.subr.bf16.mxu1 %v3340_v1  ;;  %v489_v63 = vpop.permute.xlu0 %488  ;;  %v477_v7 = vpop.permute.xlu1 %476 }
  0x9c   : > { %v3694_v22 = vsel %vm494_vm0, %v3313_v16, %v489_v63  ;;  %v3702_v27 = vsel %vm494_vm0, %v3314_v20, %v477_v7 }
  0x9d   : > { %685 = vrot.lane.b32.xlu0 %v670_v41, %s3337_s27  ;;  %822 = vrot.lane.b32.xlu1 %v3475_v42, %s3336_s26  ;;  %4378 = vst [vmem:[#allocation4_spill] sm:$0xff] %v3694_v22  ;;  %4379 = vst [vmem:[#allocation5_spill] sm:$0xff] %v3702_v27  ;;  %v587_v36 = vshll.u32 %v3702_v27, 16  ;;  %v621_v40 = vshrl.u32 %v3694_v22, 16 }
  0x9e   : > { %2728 = vmatpush2.bf16.msra.mxu0 %v3325_v43  ;;  %3265 = vmatpush2.bf16.msra.mxu1 %v3325_v43 }
  0x9f   : > { %v491_v5 = vpop.permute.xlu0 %490  ;;  %v3674_v10 = vpop.permute.xlu1 %492 }
  0xa1   : > { %777 = vrot.lane.b32.xlu0 %v3482_v44, %s3338_s28  ;;  %732 = vrot.lane.b32.xlu1 %v3475_v42, %s3335_s25 }
  0xa5   : > { %699 = vrot.lane.b32.xlu0 %v3494_v49, %s3337_s27  ;;  %824 = vrot.lane.b32.xlu1 %v3500_v51, %s3336_s26 }
  0xa9   : > { %689 = vrot.lane.b32.xlu0 %v3507_v52, %s3337_s27  ;;  %683 = vrot.lane.b32.xlu1 %v669_v53, %s3337_s27  ;;  %v575_v53 = vshll.u32 %v3466_v38, 16 }
  0xab   : > { %v577_v58 = vrot.slane %v575_v53, 1 }
  0xad   : > { %793 = vrot.lane.b32.xlu0 %v3515_v55, %s3338_s28  ;;  %775 = vrot.lane.b32.xlu1 %v670_v41, %s3338_s28  ;;  %v611_v41 = vshll.u32 %v3475_v42, 16  ;;  %v578_v59 = vor.u32 %v577_v58, %v573_v57 }
  0xaf   : > { %v613_v48 = vrot.slane %v611_v41, 1 }
  0xb1   : > { %691 = vrot.lane.b32.xlu0 %v3521_v56, %s3337_s27  ;;  %687 = vrot.lane.b32.xlu1 %v3482_v44, %s3337_s27  ;;  %v614_v54 = vor.u32 %v613_v48, %v609_v46  ;;  %v589_v46 = vrot.slane %v587_v36, 1 }
  0xb5   : > { %627 = vrot.lane.b32.xlu0 %v548_v60, %s3339_s5  ;;  %779 = vrot.lane.b32.xlu1 %v3507_v52, %s3338_s28  ;;  %v617_v60 = vshll.u32 %v3500_v51, 16 }
  0xb7   : > { %v619_v62 = vrot.slane %v617_v60, 1  ;;  %v3315_v60 = vld [vmem:[%s3404_s24 + $0x70] sm:$0xff]  }
  0xb8   : > { %v539_v63 = vsel %vm494_vm0, %v3315_v60, %v491_v5 }
  0xb9   : > { %629 = vrot.lane.b32.xlu0 %v3538_v2, %s3339_s5  ;;  %701 = vrot.lane.b32.xlu1 %v3545_v6, %s3337_s27  ;;  %v620_v1 = vor.u32 %v619_v62, %v615_v61 }
  0xbd   : > { %748 = vrot.lane.b32.xlu0 %v3555_v8, %s3341_s10  ;;  %791 = vrot.lane.b32.xlu1 %v3545_v6, %s3338_s28 }
  0xc1   : > { %840 = vrot.lane.b32.xlu0 %v3568_v13, %s3342_s13  ;;  %781 = vrot.lane.b32.xlu1 %v3521_v56, %s3338_s28 }
  0xc5   : > { %643 = vrot.lane.b32.xlu0 %v3581_v19, %s3339_s5  ;;  %703 = vrot.lane.b32.xlu1 %v3515_v55, %s3337_s27 }
  0xc9   : > { %645 = vrot.lane.b32.xlu0 %v3594_v26, %s3339_s5  ;;  %795 = vrot.lane.b32.xlu1 %v3598_v29, %s3338_s28 }
  0xcd   : > { %842 = vrot.lane.b32.xlu0 %v572_v33, %s3342_s13  ;;  %746 = vrot.lane.b32.xlu1 %v3538_v2, %s3341_s10  ;;  %v3312_v2 = vld [vmem:[%s3404_s24 + $0x30] sm:$0xff]  }
  0xce   : > { %v3662_v4 = vsel %vm494_vm0, %v3312_v2, %v475_v0  ;;  %v742_v2 = vshll.u32 %v539_v63, 16 }
  0xcf   : > { %4377 = vst [vmem:[#allocation3_spill] sm:$0xff] %v3662_v4  ;;  %v579_v11 = vshrl.u32 %v3662_v4, 16  ;;  %v3716_v35 = vrot.slane %v3662_v4, 1 }
  0xd1   : > { %762 = vrot.lane.b32.xlu0 %v3594_v26, %s3341_s10  ;;  %838 = vrot.lane.b32.xlu1 %v3555_v8, %s3342_s13 }
  0xd5   : > { %752 = vrot.lane.b32.xlu0 %v572_v33, %s3341_s10  ;;  %631 = vrot.lane.b32.xlu1 %v3555_v8, %s3339_s5  ;;  %v581_v8 = vshll.u32 %v3662_v4, 16 }
  0xd7   : > { %v583_v12 = vrot.slane %v581_v8, 1  ;;  %v3760_v8 = vrot.slane %v3694_v22, 1 }
  0xd9   : > { %647 = vrot.lane.b32.xlu0 %v608_v45, %s3339_s5  ;;  %750 = vrot.lane.b32.xlu1 %v3568_v13, %s3341_s10  ;;  %v584_v15 = vor.u32 %v583_v12, %v579_v11  ;;  %v740_v11 = vshrl.u32 %v539_v63, 16  ;;  %v744_v12 = vrot.slane %v742_v2, 1 }
  0xdb   : > { %v745_v20 = vor.u32 %v744_v12, %v740_v11 }
  0xdd   : > { %856 = vrot.lane.b32.xlu0 %v614_v54, %s3342_s13  ;;  %633 = vrot.lane.b32.xlu1 %v3568_v13, %s3339_s5 }
  0xe1   : > { %844 = vrot.lane.b32.xlu0 %v578_v59, %s3342_s13  ;;  %764 = vrot.lane.b32.xlu1 %v608_v45, %s3341_s10 }
  0xe5   : > { %635 = vrot.lane.b32.xlu0 %v572_v33, %s3339_s5  ;;  %854 = vrot.lane.b32.xlu1 %v608_v45, %s3342_s13  ;;  %v623_v33 = vshll.u32 %v3694_v22, 16  ;;  %v585_v45 = vshrl.u32 %v3702_v27, 16 }
  0xe7   : > { %v625_v41 = vrot.slane %v623_v33, 1  ;;  %v3734_v57 = vor.u32 %v589_v46, %v585_v45  ;;  %v3786_v45 = vrot.slane %v3702_v27, 1 }
  0xe9   : > { %720 = vrot.lane.b32.xlu0 %v3466_v38, %s3335_s25  ;;  %766 = vrot.lane.b32.xlu1 %v614_v54, %s3341_s10  ;;  %v626_v53 = vor.u32 %v625_v41, %v621_v40 }
  0xed   : > { %754 = vrot.lane.b32.xlu0 %v578_v59, %s3341_s10  ;;  %858 = vrot.lane.b32.xlu1 %v620_v1, %s3342_s13 }
  0xf1   : > { %783 = vrot.lane.b32.xlu0 %v3659_v3, %s3338_s28  ;;  %649 = vrot.lane.b32.xlu1 %v614_v54, %s3339_s5 }
  0xf5   : > { %812 = vrot.lane.b32.xlu0 %v3662_v4, %s3336_s26  ;;  %705 = vrot.lane.b32.xlu1 %v3598_v29, %s3337_s27 }
  0xf7   : > { %v3672_v9 = vpop.permute.xlu0 %714 }
  0xf9   : > { %734 = vrot.lane.b32.xlu0 %v3500_v51, %s3335_s25  ;;  %637 = vrot.lane.b32.xlu1 %v578_v59, %s3339_s5 }
  0xfb   : > { %v3680_v13 = vpop.permute.xlu0 %806  ;;  %v3682_v14 = vpop.permute.xlu1 %712 }
  0xfd   : > { %693 = vrot.lane.b32.xlu0 %v3659_v3, %s3337_s27  ;;  %846 = vrot.lane.b32.xlu1 %v584_v15, %s3342_s13 }
  0xff   : > { %v3688_v17 = vpop.permute.xlu0 %716  ;;  %v3691_v21 = vpop.permute.xlu1 %804 }
 0x101   : > { %722 = vrot.lane.b32.xlu0 %v3662_v4, %s3335_s25  ;;  %768 = vrot.lane.b32.xlu1 %v620_v1, %s3341_s10 }
 0x103   : > { %v3699_v24 = vpop.permute.xlu0 %730  ;;  %v3704_v28 = vpop.permute.xlu1 %808 }
 0x105   : > { %756 = vrot.lane.b32.xlu0 %v584_v15, %s3341_s10  ;;  %797 = vrot.lane.b32.xlu1 %v3707_v30, %s3338_s28 }
 0x107   : > { %v3713_v34 = vpop.permute.xlu0 %820  ;;  %v3719_v39 = vpop.permute.xlu1 %728 }
 0x109   : > { %785 = vrot.lane.b32.xlu0 %v3716_v35, %s3338_s28  ;;  %826 = vrot.lane.b32.xlu1 %v3694_v22, %s3336_s26 }
 0x10b   : > { %v3726_v43 = vpop.permute.xlu0 %810  ;;  %v3729_v48 = vpop.permute.xlu1 %718 }
 0x10d   : > { %814 = vrot.lane.b32.xlu0 %v3702_v27, %s3336_s26  ;;  %860 = vrot.lane.b32.xlu1 %v626_v53, %s3342_s13 }
 0x10f   : > { %v686_v54 = vpop.permute.xlu0 %685  ;;  %v3736_v58 = vpop.permute.xlu1 %822 }
 0x111   : > { %848 = vrot.lane.b32.xlu0 %v3734_v57, %s3342_s13  ;;  %651 = vrot.lane.b32.xlu1 %v620_v1, %s3339_s5 }
 0x113   : > { %v778_v59 = vpop.permute.xlu0 %777  ;;  %v3742_v61 = vpop.permute.xlu1 %732 }
 0x115   : > { %736 = vrot.lane.b32.xlu0 %v3694_v22, %s3335_s25  ;;  %707 = vrot.lane.b32.xlu1 %v3707_v30, %s3337_s27 }
 0x117   : > { %v3748_v62 = vpop.permute.xlu0 %699  ;;  %v3751_v0 = vpop.permute.xlu1 %824 }
 0x119   : > { %639 = vrot.lane.b32.xlu0 %v584_v15, %s3339_s5  ;;  %770 = vrot.lane.b32.xlu1 %v626_v53, %s3341_s10 }
 0x11b   : > { %v3755_v1 = vpop.permute.xlu0 %689  ;;  %v3757_v7 = vpop.permute.xlu1 %683 }
 0x11d   : > { %695 = vrot.lane.b32.xlu0 %v3716_v35, %s3337_s27  ;;  %799 = vrot.lane.b32.xlu1 %v3760_v8, %s3338_s28 }
 0x11f   : > { %v3766_v5 = vpop.permute.xlu0 %793  ;;  %v3768_v15 = vpop.permute.xlu1 %775 }
 0x121   : > { %653 = vrot.lane.b32.xlu0 %v626_v53, %s3339_s5  ;;  %828 = vrot.lane.b32.xlu1 %v539_v63, %s3336_s26 }
 0x123   : > { %v3772_v16 = vpop.permute.xlu0 %691  ;;  %v3774_v33 = vpop.permute.xlu1 %687 }
 0x125   : > { %862 = vrot.lane.b32.xlu0 %v745_v20, %s3342_s13  ;;  %724 = vrot.lane.b32.xlu1 %v3702_v27, %s3335_s25  ;;  %v3316_v27 = vld [vmem:[%s3404_s24 + $0x78] sm:$0xff]  }
 0x127   : > { %v628_v36 = vpop.permute.xlu0 %627  ;;  %v3779_v40 = vpop.permute.xlu1 %779 }
 0x129   : > { %758 = vrot.lane.b32.xlu0 %v3734_v57, %s3341_s10  ;;  %709 = vrot.lane.b32.xlu1 %v3760_v8, %s3337_s27 }
 0x12b   : > { %v630_v41 = vpop.permute.xlu0 %629  ;;  %v3788_v46 = vpop.permute.xlu1 %701 }
 0x12c   : > { %v871_v53 = vsel %vm867_vm1, %v3434_v25, %v630_v41 }
 0x12d   : > { %v900_v60 = vsel %vm896_vm2, %v871_v53, %v686_v54  ;;  %787 = vrot.lane.b32.xlu0 %v3786_v45, %s3338_s28  ;;  %738 = vrot.lane.b32.xlu1 %v539_v63, %s3335_s25  ;;  %v3806_v53 = vrot.slane %v539_v63, 1 }
 0x12e   : > { %v929_v2 = vsel %vm925_vm3, %v900_v60, %v3672_v9  ;;  %v3812_v60 = vsel %vm494_vm0, %v3316_v27, %v3674_v10 }
 0x12f   : > { %v749_v11 = vpop.permute.xlu0 %748  ;;  %v792_v12 = vpop.permute.xlu1 %791  ;;  %v832_v4 = vshrl.u32 %v3812_v60, 16 }
 0x130   : > { %v958_v6 = vsel %vm954_vm4, %v929_v2, %v749_v11  ;;  %v3343_v2 = vmov 1966171168  }
 0x131   : > { %v987_v25 = vsel %vm983_vm5, %v958_v6, %v778_v59  ;;  %816 = vrot.lane.b32.xlu0 %v3489_v47, %s3336_s26  ;;  %772 = vrot.lane.b32.xlu1 %v745_v20, %s3341_s10  ;;  %v1087_v11 = vunpack.c.l.s4 %v3343_v2  ;;  %v1089_v6 = vlaneseq  ;;  %v834_v59 = vshll.u32 %v3812_v60, 16 }
 0x132   : > { %v1016_v54 = vsel %vm1012_vm6, %v987_v25, %v3680_v13  ;;  %v869_v25 = vsel %vm867_vm1, %v3497_v50, %v628_v36 }
 0x133   : > { %v841_v41 = vpop.permute.xlu0 %840  ;;  %v3808_v9 = vpop.permute.xlu1 %781  ;;  %v1088_v10 = vunpack.c.0.s8 %v1087_v11  ;;  %v1090_v27 = vshrl.u32 %v1089_v6, 7  ;;  %v898_v50 = vsel %vm896_vm2, %v869_v25, %v3757_v7 }
 0x134   : > { %v1045_v2 = vsel %vm1041_vm7, %v1016_v54, %v841_v41 }
 0x135   : > { %801 = vrot.lane.b32.xlu0 %v3806_v53, %s3338_s28  ;;  %641 = vrot.lane.b32.xlu1 %v3734_v57, %s3339_s5  ;;  %v3839_v36 = vsub.s32 %v1088_v10, %v1090_v27  ;;  %v1133_v54 = vcombine.low %v1045_v2, %v3507_v52 }
 0x137   : > { %v644_v13 = vpop.permute.xlu0 %643  ;;  %v3819_v63 = vpop.permute.xlu1 %703  ;;  %v1141_v7 = vrot.slane %v1133_v54, %v3839_v36 }
 0x138   : > { %v885_v20 = vsel %vm867_vm1, %v3489_v47, %v644_v13  ;;  %v836_v13 = vrot.slane %v834_v59, 1  ;;  %v927_v59 = vsel %vm925_vm3, %v898_v50, %v3682_v14 }
 0x139   : > { %697 = vrot.lane.b32.xlu0 %v3786_v45, %s3337_s27  ;;  %v914_v57 = vsel %vm896_vm2, %v885_v20, %v3748_v62  ;;  %850 = vrot.lane.b32.xlu1 %v3581_v19, %s3342_s13 }
 0x13a   : > { %v943_v6 = vsel %vm925_vm3, %v914_v57, %v3719_v39  ;;  %v837_v20 = vor.u32 %v836_v13, %v832_v4  ;;  %v1134_v39 = vcombine.high %v1045_v2, %v3507_v52  ;;  %v1149_v2 = vcombine.high %v1141_v7, %v1141_v7 }
 0x13b   : > { %v646_v22 = vpop.permute.xlu0 %645  ;;  %v3833_v11 = vpop.permute.xlu1 %795 }
 0x13c   : > { %v1148_v52 = vrot.slane %v1134_v39, %v3839_v36 }
 0x13d   : > { %726 = vrot.lane.b32.xlu0 %v3489_v47, %s3335_s25  ;;  %830 = vrot.lane.b32.xlu1 %v3812_v60, %s3336_s26 }
 0x13f   : > { %v843_v62 = vpop.permute.xlu0 %842  ;;  %v747_v41 = vpop.permute.xlu1 %746 }
 0x140   : > { %v956_v10 = vsel %vm954_vm4, %v927_v59, %v747_v41  ;;  %v1150_v41 = vcombine.high %v1148_v52, %v1148_v52  ;;  %v1157_v59 = vrot.slane %v1141_v7, %v3839_v36 }
 0x141   : > { %760 = vrot.lane.b32.xlu0 %v3581_v19, %s3341_s10  ;;  %v985_v47 = vsel %vm983_vm5, %v956_v10, %v3768_v15  ;;  %864 = vrot.lane.b32.xlu1 %v837_v20, %s3342_s13  ;;  %v1171_v20 = vrot.slane %v1149_v2, %v3839_v36 }
 0x142   : > { %v1014_v27 = vsel %vm1012_vm6, %v985_v47, %v3691_v21 }
 0x143   : > { %v763_v25 = vpop.permute.xlu0 %762  ;;  %v839_v14 = vpop.permute.xlu1 %838 }
 0x144   : > { %v972_v4 = vsel %vm954_vm4, %v943_v6, %v763_v25  ;;  %v1043_v57 = vsel %vm1041_vm7, %v1014_v27, %v839_v14  ;;  %v887_v27 = vsel %vm867_vm1, %v3459_v37, %v646_v22 }
 0x145   : > { %v1001_v13 = vsel %vm983_vm5, %v972_v4, %v792_v12  ;;  %818 = vrot.lane.b32.xlu0 %v3459_v37, %s3336_s26  ;;  %v1084_v19 = vcombine.low %v1043_v57, %v3482_v44  ;;  %v1085_v15 = vcombine.high %v1043_v57, %v3482_v44  ;;  %789 = vrot.lane.b32.xlu1 %v3494_v49, %s3338_s28  ;;  %s3266_s26 = smul.u32 100, %s4385_s16 }
 0x146   : > { %v3870_v21 = vsel %vm1012_vm6, %v1001_v13, %v3713_v34  ;;  %v1164_v34 = vrot.slane %v1148_v52, %v3839_v36  ;;  %v1178_v52 = vrot.slane %v1150_v41, %v3839_v36  ;;  %v1179_v13 = vcombine.high %v1157_v59, %v1157_v59 }
 0x147   : > { %v753_v6 = vpop.permute.xlu0 %752  ;;  %v1092_v50 = vrot.slane %v1084_v19, %v3839_v36  ;;  %v1099_v54 = vrot.slane %v1085_v15, %v3839_v36  ;;  %v632_v12 = vpop.permute.xlu1 %631  ;;  %v1181_v19 = vcombine.high %v1171_v20, %v1171_v20  ;;  %s4325_s5 = scalar_lea.vmem %s4370_s4, %s3266_s26 }
 0x148   : > { %v873_v44 = vsel %vm867_vm1, %v3424_v18, %v632_v12  ;;  %v916_v12 = vsel %vm896_vm2, %v887_v27, %v3788_v46 }
 0x149   : > { %v1100_v39 = vcombine.high %v1092_v50, %v1092_v50  ;;  %v1101_v10 = vcombine.high %v1099_v54, %v1099_v54  ;;  %v1115_v47 = vrot.slane %v1099_v54, %v3839_v36  ;;  %852 = vrot.lane.b32.xlu1 %v3594_v26, %s3342_s13  ;;  %v1108_v25 = vrot.slane %v1092_v50, %v3839_v36 }
 0x14a   : > { %v902_v7 = vsel %vm896_vm2, %v873_v44, %v3774_v33  ;;  %v1180_v54 = vcombine.high %v1164_v34, %v1164_v34 }
 0x14b   : > { %v648_v14 = vpop.permute.xlu0 %647  ;;  %v1122_v18 = vrot.slane %v1100_v39, %v3839_v36  ;;  %v1129_v4 = vrot.slane %v1101_v10, %v3839_v36  ;;  %v1131_v2 = vcombine.high %v1115_v47, %v1115_v47  ;;  %v931_v57 = vsel %vm925_vm3, %v902_v7, %v3688_v17  ;;  %v751_v26 = vpop.permute.xlu1 %750 }
 0x14c   : > { %v960_v37 = vsel %vm954_vm4, %v931_v57, %v751_v26 }
 0x14d   : > { %v1776_v22 = vcombine.low %v1108_v25, %v1122_v18  ;;  %v3094_v15 = vcombine.high %v1108_v25, %v1122_v18  ;;  %v1778_v50 = vcombine.low %v1115_v47, %v1129_v4  ;;  %v989_v33 = vsel %vm983_vm5, %v960_v37, %v3779_v40 }
 0x14e   : > { %v1018_v17 = vsel %vm1012_vm6, %v989_v33, %v3704_v28  ;;  %v1779_v39 = vcombine.low %v1131_v2, %v1157_v59  ;;  %v1842_v18 = vcombine.low %v1171_v20, %v1179_v13  ;;  %v1843_v40 = vcombine.low %v1181_v19, %v1164_v34 }
 0x14f   : > { %v857_v44 = vpop.permute.xlu0 %856  ;;  %v1047_v41 = vsel %vm1041_vm7, %v1018_v17, %v843_v62  ;;  %v634_v10 = vpop.permute.xlu1 %633  ;;  %v1786_v7 = vrot.slane %v1776_v22, %v3839_v36  ;;  %v1793_v25 = vrot.slane %v3094_v15, %v3839_v36  ;;  %v1800_v47 = vrot.slane %v1778_v50, %v3839_v36 }
 0x150   : > { %v875_v4 = vsel %vm867_vm1, %v3431_v23, %v634_v10  ;;  %v1807_v46 = vrot.slane %v1779_v39, %v3839_v36  ;;  %v945_v62 = vsel %vm925_vm3, %v916_v12, %v3699_v24  ;;  %v1182_v27 = vcombine.low %v1047_v41, %v3521_v56 }
 0x151   : > { %v904_v28 = vsel %vm896_vm2, %v875_v4, %v3755_v1  ;;  %v1809_v59 = vcombine.high %v1786_v7, %v1793_v25  ;;  %v1183_v2 = vcombine.high %v1047_v41, %v3521_v56  ;;  %v1808_v19 = vcombine.low %v1786_v7, %v1793_v25 }
 0x152   : > { %v933_v20 = vsel %vm925_vm3, %v904_v28, %v3729_v48  ;;  %v1811_v57 = vcombine.high %v1800_v47, %v1807_v46  ;;  %v1810_v1 = vcombine.low %v1800_v47, %v1807_v46  ;;  %v1844_v37 = vcombine.low %v1178_v52, %v1180_v54 }
 0x153   : > { %v845_v34 = vpop.permute.xlu0 %844  ;;  %v765_v26 = vpop.permute.xlu1 %764  ;;  %v962_v23 = vsel %vm954_vm4, %v933_v20, %v753_v6  ;;  %v1825_v13 = vrot.slane %v1809_v59, %v3839_v36  ;;  %v3917_v24 = vrot.slane %v1842_v18, %v3839_v36  ;;  %v3920_v22 = vrot.slane %v1843_v40, %v3839_v36 }
 0x154   : > { %v974_v56 = vsel %vm954_vm4, %v945_v62, %v765_v26  ;;  %v889_v48 = vsel %vm867_vm1, %v3447_v31, %v648_v14  ;;  %v991_v6 = vsel %vm983_vm5, %v962_v23, %v3808_v9  ;;  %v1839_v50 = vrot.slane %v1811_v57, %v3839_v36 }
 0x155   : > { %v1003_v15 = vsel %vm983_vm5, %v974_v56, %v3766_v5  ;;  %v1190_v52 = vrot.slane %v1182_v27, %v3839_v36  ;;  %v1197_v33 = vrot.slane %v1183_v2, %v3839_v36  ;;  %v1020_v12 = vsel %vm1012_vm6, %v991_v6, %v3726_v43 }
 0x156   : > { %v1032_v54 = vsel %vm1012_vm6, %v1003_v15, %v3736_v58  ;;  %v1049_v5 = vsel %vm1041_vm7, %v1020_v12, %v845_v34  ;;  %v1841_v39 = vcombine.low %v1825_v13, %v1839_v50  ;;  %v1818_v9 = vrot.slane %v1808_v19, %v3839_v36 }
 0x157   : > { %v636_v17 = vpop.permute.xlu0 %635  ;;  %v1061_v31 = vsel %vm1041_vm7, %v1032_v54, %v857_v44  ;;  %v855_v14 = vpop.permute.xlu1 %854  ;;  %v1231_v7 = vcombine.low %v1049_v5, %v3659_v3  ;;  %v1232_v58 = vcombine.high %v1049_v5, %v3659_v3  ;;  %v1832_v44 = vrot.slane %v1810_v1, %v3839_v36 }
 0x158   : > { %v1525_v41 = vcombine.low %v1061_v31, %v3598_v29  ;;  %v1526_v10 = vcombine.high %v1061_v31, %v3598_v29  ;;  %v1059_v43 = vsel %vm1041_vm7, %v3870_v21, %v855_v14  ;;  %3110 = vmatprep.mubr.msk.bf16.mxu0 %vm867_vm1, %v1841_v39  ;;  %v1875_v25 = vcombine.high %v3917_v24, %v3920_v22 }
 0x159   : > { %v3950_v47 = vrot.slane %v1844_v37, %v3839_v36  ;;  %v1198_v18 = vcombine.high %v1190_v52, %v1190_v52  ;;  %v918_v29 = vsel %vm896_vm2, %v889_v48, %v3819_v63  ;;  %v1239_v40 = vrot.slane %v1231_v7, %v3839_v36 }
 0x15a   : > { %v1199_v4 = vcombine.high %v1197_v33, %v1197_v33  ;;  %v1246_v21 = vrot.slane %v1232_v58, %v3839_v36  ;;  %v1476_v46 = vcombine.low %v1059_v43, %v3515_v55  ;;  %v1840_v28 = vcombine.low %v1818_v9, %v1832_v44 }
 0x15b   : > { %v3955_v3 = vpop.permute.xlu0 %720  ;;  %v767_v62 = vpop.permute.xlu1 %766  ;;  %v3960_v59 = vrot.slane %v1525_v41, %v3839_v36  ;;  %v1540_v27 = vrot.slane %v1526_v10, %v3839_v36  ;;  %v1213_v2 = vrot.slane %v1197_v33, %v3839_v36  ;;  %v1247_v20 = vcombine.high %v1239_v40, %v1239_v40 }
 0x15c   : > { %v1255_v63 = vrot.slane %v1239_v40, %v3839_v36  ;;  %v1477_v34 = vcombine.high %v1059_v43, %v3515_v55  ;;  %2730 = vmatmul.mubr.bf16.vlgmr.msra.gmra.mxu0 %v1840_v28  ;;  %v3967_v57 = vrot.slane %v1875_v25, %v3839_v36  ;;  %v1874_v26 = vcombine.low %v3917_v24, %v3920_v22 }
 0x15d   : > { %v1248_v23 = vcombine.high %v1246_v21, %v1246_v21  ;;  %v1262_v13 = vrot.slane %v1246_v21, %v3839_v36  ;;  %v1269_v19 = vrot.slane %v1247_v20, %v3839_v36  ;;  %v947_v1 = vsel %vm925_vm3, %v918_v29, %v3742_v61 }
 0x15e   : > { %v1220_v56 = vrot.slane %v1198_v18, %v3839_v36  ;;  %v1227_v55 = vrot.slane %v1199_v4, %v3839_v36  ;;  %v1277_v48 = vcombine.high %v1255_v63, %v1255_v63  ;;  %v1484_v15 = vrot.slane %v1476_v46, %v3839_v36 }
 0x15f   : > { %v3975_v37 = vpop.permute.xlu0 %754  ;;  %v859_v6 = vpop.permute.xlu1 %858  ;;  %v1541_v24 = vcombine.high %v3960_v59, %v3960_v59  ;;  %v1542_v22 = vcombine.high %v1540_v27, %v1540_v27  ;;  %v1229_v50 = vcombine.high %v1213_v2, %v1213_v2  ;;  %v877_v33 = vsel %vm867_vm1, %v3450_v32, %v636_v17 }
 0x160   : > { %v3985_v61 = vrot.slane %v1540_v27, %v3839_v36  ;;  %v1911_v54 = vcombine.low %v1269_v19, %v1277_v48  ;;  %v1491_v12 = vrot.slane %v1477_v34, %v3839_v36  ;;  %v976_v31 = vsel %vm954_vm4, %v947_v1, %v767_v62 }
 0x161   : > { %v1276_v5 = vrot.slane %v1248_v23, %v3839_v36  ;;  %v1278_v14 = vcombine.high %v1262_v13, %v1262_v13  ;;  %v1910_v39 = vcombine.low %v1229_v50, %v1255_v63  ;;  %v3991_v9 = vrot.slane %v1874_v26, %v3839_v36 }
 0x162   : > { %v1206_v10 = vrot.slane %v1190_v52, %v3839_v36  ;;  %v1909_v7 = vcombine.low %v1213_v2, %v1227_v55  ;;  %v1492_v32 = vcombine.high %v1484_v15, %v1484_v15  ;;  %v1005_v17 = vsel %vm983_vm5, %v976_v31, %v3833_v11 }
 0x163   : > { %v784_v41 = vpop.permute.xlu0 %783  ;;  %v650_v58 = vpop.permute.xlu1 %649  ;;  %v3997_v43 = vrot.slane %v1541_v24, %v3839_v36  ;;  %v4000_v44 = vrot.slane %v1542_v22, %v3839_v36  ;;  %v4003_v25 = vrot.slane %v1911_v54, %v3839_v36  ;;  %v906_v18 = vsel %vm896_vm2, %v877_v33, %v3772_v16 }
 0x164   : > { %v1572_v52 = vcombine.high %v3985_v61, %v3985_v61  ;;  %v1493_v29 = vcombine.high %v1491_v12, %v1491_v12  ;;  %v1034_v11 = vsel %vm1012_vm6, %v1005_v17, %v3751_v0  ;;  %v1845_v40 = vcombine.low %v1206_v10, %v1220_v56 }
 0x165   : > { %v1279_v4 = vcombine.high %v1269_v19, %v1269_v19  ;;  %v1932_v21 = vrot.slane %v1910_v39, %v3839_v36  ;;  %v1975_v46 = vcombine.low %v1276_v5, %v1278_v14  ;;  %v1063_v28 = vsel %vm1041_vm7, %v1034_v11, %v859_v6 }
 0x166   : > { %v1507_v27 = vrot.slane %v1491_v12, %v3839_v36  ;;  %v1514_v2 = vrot.slane %v1492_v32, %v3839_v36  ;;  %v1574_v16 = vcombine.low %v1063_v28, %v3707_v30  ;;  %v1873_v20 = vrot.slane %v1845_v40, %v3839_v36 }
 0x167   : > { %v813_v62 = vpop.permute.xlu0 %812  ;;  %v4017_v63 = vpop.permute.xlu1 %705  ;;  %v1500_v0 = vrot.slane %v1484_v15, %v3839_v36  ;;  %v3095_v34 = vcombine.high %v1206_v10, %v1220_v56  ;;  %v1925_v26 = vrot.slane %v1909_v7, %v3839_v36  ;;  %v1943_v23 = vcombine.high %v1932_v21, %v4003_v25 }
 0x168   : > { %v1521_v19 = vrot.slane %v1493_v29, %v3839_v36  ;;  %v1582_v1 = vrot.slane %v1574_v16, %v3839_v36  ;;  %v1877_v55 = vcombine.high %v3950_v47, %v1873_v20  ;;  %v1876_v48 = vcombine.low %v3950_v47, %v1873_v20 }
 0x169   : > { %v1974_v6 = vcombine.low %v1279_v4, %v1262_v13  ;;  %v4027_v24 = vrot.slane %v1975_v46, %v3839_v36  ;;  %v935_v15 = vsel %vm925_vm3, %v906_v18, %v3955_v3  ;;  %v1918_v56 = vrot.slane %v3095_v34, %v3839_v36 }
 0x16a   : > { %v1523_v50 = vcombine.high %v1507_v27, %v1507_v27  ;;  %v2238_v33 = vcombine.low %v1500_v0, %v1514_v2  ;;  %v1590_v54 = vcombine.high %v1582_v1, %v1582_v1  ;;  %v1971_v12 = vrot.slane %v1943_v23, %v3839_v36 }
 0x16b   : > { %v4032_v22 = vpop.permute.xlu0 %734  ;;  %v4035_v31 = vpop.permute.xlu1 %637  ;;  %v1905_v47 = vrot.slane %v1877_v55, %v3839_v36  ;;  %v1898_v13 = vrot.slane %v1876_v48, %v3839_v36  ;;  %v1941_v5 = vcombine.high %v1918_v56, %v1925_v26  ;;  %v1549_v14 = vrot.slane %v3960_v59, %v3839_v36 }
 0x16c   : > { %v3098_v3 = vcombine.high %v1500_v0, %v1514_v2  ;;  %v2240_v39 = vcombine.low %v1507_v27, %v1521_v19  ;;  %v4042_v10 = vrot.slane %v1590_v54, %v3839_v36  ;;  %v964_v7 = vsel %vm954_vm4, %v935_v15, %v3975_v37 }
 0x16d   : > { %v1575_v32 = vcombine.high %v1063_v28, %v3707_v30  ;;  %v1907_v17 = vcombine.low %v3967_v57, %v1905_v47  ;;  %v1906_v18 = vcombine.low %v3991_v9, %v1898_v13  ;;  %v1957_v29 = vrot.slane %v1941_v5, %v3839_v36 }
 0x16e   : > { %v4053_v59 = vrot.slane %v1974_v6, %v3839_v36  ;;  %v4056_v40 = vrot.slane %v1582_v1, %v3839_v36  ;;  %v993_v4 = vsel %vm983_vm5, %v964_v7, %v784_v41  ;;  %v1942_v37 = vcombine.low %v1932_v21, %v4003_v25 }
 0x16f   : > { %v4050_v11 = vpop.permute.xlu0 %693  ;;  %v847_v46 = vpop.permute.xlu1 %846  ;;  %3111 = vmatprep.mubr.msk.bf16.mxu0 %vm867_vm1, %v1907_v17  ;;  %v1973_v30 = vcombine.low %v1957_v29, %v1971_v12  ;;  %v1571_v57 = vcombine.high %v1549_v14, %v1549_v14  ;;  %v2241_v9 = vcombine.low %v1523_v50, %v1549_v14  ;;  %v2248_v28 = vrot.slane %v2238_v33, %v3839_v36 }
 0x170   : > { %v2307_v27 = vcombine.low %v4056_v40, %v4042_v10  ;;  %v891_v2 = vsel %vm867_vm1, %v3475_v42, %v650_v58  ;;  %2738 = vmatmul.mubr.bf16.gmra.mxu0 %v1906_v18  ;;  %v1022_v16 = vsel %vm1012_vm6, %v993_v4, %v813_v62  ;;  %v1940_v41 = vcombine.low %v1918_v56, %v1925_v26 }
 0x171   : > { %v4068_v25 = vrot.slane %v1575_v32, %v3839_v36  ;;  %3112 = vmatprep.mubr.msk.bf16.mxu0 %vm867_vm1, %v1973_v30  ;;  %v2255_v21 = vrot.slane %v3098_v3, %v3839_v36  ;;  %v2262_v20 = vrot.slane %v2240_v39, %v3839_v36  ;;  %v2269_v0 = vrot.slane %v2241_v9, %v3839_v36 }
 0x172   : > { %v1964_v23 = vrot.slane %v1942_v37, %v3839_v36  ;;  %v1051_v42 = vsel %vm1041_vm7, %v1022_v16, %v847_v46  ;;  %v1573_v62 = vcombine.high %v3997_v43, %v3997_v43  ;;  %v2304_v26 = vcombine.low %v3997_v43, %v1571_v57 }
 0x173   : > { %v723_v34 = vpop.permute.xlu0 %722  ;;  %v769_v58 = vpop.permute.xlu1 %768  ;;  %v2271_v19 = vcombine.high %v2248_v28, %v2255_v21  ;;  %v2273_v1 = vcombine.high %v2262_v20, %v2269_v0  ;;  %v2270_v55 = vcombine.low %v2248_v28, %v2255_v21  ;;  %v2272_v48 = vcombine.low %v2262_v20, %v2269_v0 }
 0x174   : > { %v2335_v6 = vrot.slane %v2307_v27, %v3839_v36  ;;  %v1950_v15 = vrot.slane %v1940_v41, %v3839_v36  ;;  %v1280_v56 = vcombine.low %v1051_v42, %v3716_v35  ;;  %v2305_v50 = vcombine.low %v1573_v62, %v3985_v61 }
 0x175   : > { %v2287_v33 = vrot.slane %v2271_v19, %v3839_v36  ;;  %v2301_v54 = vrot.slane %v2273_v1, %v3839_v36  ;;  %v2280_v12 = vrot.slane %v2270_v55, %v3839_v36  ;;  %v2294_v43 = vrot.slane %v2272_v48, %v3839_v36 }
 0x176   : > { %v1972_v13 = vcombine.low %v1950_v15, %v1964_v23  ;;  %v1281_v5 = vcombine.high %v1051_v42, %v3716_v35  ;;  %v1288_v14 = vrot.slane %v1280_v56, %v3839_v36  ;;  %v2306_v3 = vcombine.low %v4000_v44, %v1572_v52 }
 0x177   : > { %v757_v47 = vpop.permute.xlu0 %756  ;;  %v798_v39 = vpop.permute.xlu1 %797  ;;  %v2303_v7 = vcombine.low %v2287_v33, %v2301_v54  ;;  %v2302_v32 = vcombine.low %v2280_v12, %v2294_v43  ;;  %v2314_v17 = vrot.slane %v2304_v26, %v3839_v36  ;;  %v2321_v18 = vrot.slane %v2305_v50, %v3839_v36 }
 0x178   : > { %v1591_v29 = vcombine.high %v4068_v25, %v4068_v25  ;;  %v4099_v35 = vrot.slane %v4068_v25, %v3839_v36  ;;  %v920_v4 = vsel %vm896_vm2, %v891_v2, %v4017_v63  ;;  %2746 = vmatmul.mubr.bf16.gmra.mxu0 %v1972_v13  ;;  %v1296_v61 = vcombine.high %v1288_v14, %v1288_v14 }
 0x179   : > { %v879_v44 = vsel %vm867_vm1, %v3466_v38, %v4035_v31  ;;  %3117 = vmatprep.mubr.msk.bf16.mxu1 %vm867_vm1, %v2303_v7  ;;  %v2328_v52 = vrot.slane %v2306_v3, %v3839_v36  ;;  %v2337_v37 = vcombine.high %v2314_v17, %v2321_v18  ;;  %v2336_v46 = vcombine.low %v2314_v17, %v2321_v18 }
 0x17a   : > { %v949_v57 = vsel %vm925_vm3, %v920_v4, %v4032_v22  ;;  %2786 = vmatmul.mubr.bf16.vlgmr.msra.gmra.mxu1 %v2302_v32  ;;  %v1304_v9 = vrot.slane %v1288_v14, %v3839_v36  ;;  %v1318_v63 = vrot.slane %v1296_v61, %v3839_v36  ;;  %v908_v28 = vsel %vm896_vm2, %v879_v44, %v4050_v11 }
 0x17b   : > { %v786_v30 = vpop.permute.xlu0 %785  ;;  %v827_v27 = vpop.permute.xlu1 %826  ;;  %v1295_v38 = vrot.slane %v1281_v5, %v3839_v36  ;;  %v978_v31 = vsel %vm954_vm4, %v949_v57, %v769_v58  ;;  %v2339_v2 = vcombine.high %v2328_v52, %v2335_v6  ;;  %v2338_v16 = vcombine.low %v2328_v52, %v2335_v6 }
 0x17c   : > { %v1976_v41 = vcombine.low %v1304_v9, %v1318_v63  ;;  %v3096_v25 = vcombine.high %v1304_v9, %v1318_v63  ;;  %v937_v21 = vsel %vm925_vm3, %v908_v28, %v723_v34  ;;  %v1007_v22 = vsel %vm983_vm5, %v978_v31, %v798_v39 }
 0x17d   : > { %v2353_v20 = vrot.slane %v2337_v37, %v3839_v36  ;;  %v2367_v0 = vrot.slane %v2339_v2, %v3839_v36  ;;  %v2346_v23 = vrot.slane %v2336_v46, %v3839_v36  ;;  %v2360_v11 = vrot.slane %v2338_v16, %v3839_v36 }
 0x17e   : > { %v1998_v62 = vrot.slane %v1976_v41, %v3839_v36  ;;  %v2005_v58 = vrot.slane %v3096_v25, %v3839_v36  ;;  %v966_v26 = vsel %vm954_vm4, %v937_v21, %v757_v47  ;;  %v1036_v19 = vsel %vm1012_vm6, %v1007_v22, %v827_v27 }
 0x17f   : > { %v815_v42 = vpop.permute.xlu0 %814  ;;  %v861_v34 = vpop.permute.xlu1 %860  ;;  %v2369_v1 = vcombine.low %v2353_v20, %v2367_v0  ;;  %v2368_v55 = vcombine.low %v2346_v23, %v2360_v11  ;;  %v2007_v6 = vcombine.high %v4053_v59, %v4027_v24  ;;  %v1619_v15 = vrot.slane %v1591_v29, %v3839_v36 }
 0x180   : > { %v1065_v48 = vsel %vm1041_vm7, %v1036_v19, %v861_v34  ;;  %v995_v56 = vsel %vm983_vm5, %v966_v26, %v786_v30  ;;  %v2009_v33 = vcombine.high %v1998_v62, %v2005_v58  ;;  %v1621_v54 = vcombine.high %v4099_v35, %v4099_v35 }
 0x181   : > { %v1623_v50 = vcombine.low %v1065_v48, %v3760_v8  ;;  %v1297_v12 = vcombine.high %v1295_v38, %v1295_v38  ;;  %3118 = vmatprep.mubr.msk.bf16.mxu1 %vm867_vm1, %v2369_v1  ;;  %v1024_v43 = vsel %vm1012_vm6, %v995_v56, %v815_v42  ;;  %v3099_v13 = vcombine.high %v4056_v40, %v4042_v10 }
 0x182   : > { %2794 = vmatmul.mubr.bf16.gmra.mxu1 %v2368_v55  ;;  %v2037_v3 = vrot.slane %v2009_v33, %v3839_v36  ;;  %v2023_v7 = vrot.slane %v2007_v6, %v3839_v36  ;;  %v2008_v18 = vcombine.low %v1998_v62, %v2005_v58  ;;  %v2371_v29 = vcombine.low %v4099_v35, %v1619_v15 }
 0x183   : > { %v849_v47 = vpop.permute.xlu0 %848  ;;  %v1631_v5 = vrot.slane %v1623_v50, %v3839_v36  ;;  %v652_v14 = vpop.permute.xlu1 %651  ;;  %v1311_v4 = vrot.slane %v1295_v38, %v3839_v36  ;;  %v1325_v61 = vrot.slane %v1297_v12, %v3839_v36  ;;  %v2006_v37 = vcombine.low %v4053_v59, %v4027_v24 }
 0x184   : > { %v1053_v39 = vsel %vm1041_vm7, %v1024_v43, %v849_v47  ;;  %v2039_v44 = vcombine.low %v2023_v7, %v2037_v3  ;;  %v1624_v30 = vcombine.high %v1065_v48, %v3760_v8  ;;  %v2380_v63 = vrot.slane %v3099_v13, %v3839_v36 }
 0x185   : > { %v1329_v32 = vcombine.low %v1053_v39, %v3786_v45  ;;  %v1330_v17 = vcombine.high %v1053_v39, %v3786_v45  ;;  %v1639_v10 = vcombine.high %v1631_v5, %v1631_v5  ;;  %v1647_v40 = vrot.slane %v1631_v5, %v3839_v36 }
 0x186   : > { %3113 = vmatprep.mubr.msk.bf16.mxu0 %vm867_vm1, %v2039_v44  ;;  %v2030_v24 = vrot.slane %v2008_v18, %v3839_v36  ;;  %v2387_v59 = vrot.slane %v2371_v29, %v3839_v36  ;;  %v1327_v8 = vcombine.high %v1311_v4, %v1311_v4  ;;  %v2040_v2 = vcombine.low %v1311_v4, %v1325_v61 }
 0x187   : > { %v1337_v52 = vrot.slane %v1329_v32, %v3839_v36  ;;  %v737_v46 = vpop.permute.xlu0 %736  ;;  %v4153_v45 = vrot.slane %v1639_v10, %v3839_v36  ;;  %v1669_v35 = vcombine.high %v1647_v40, %v1647_v40  ;;  %v4156_v57 = vrot.slane %v1330_v17, %v3839_v36  ;;  %v708_v9 = vpop.permute.xlu1 %707 }
 0x188   : > { %v2372_v38 = vcombine.low %v1621_v54, %v1647_v40  ;;  %v2016_v25 = vrot.slane %v2006_v37, %v3839_v36  ;;  %v1638_v22 = vrot.slane %v1624_v30, %v3839_v36  ;;  %v893_v0 = vsel %vm867_vm1, %v3500_v51, %v652_v14 }
 0x189   : > { %v1345_v28 = vcombine.high %v1337_v52, %v1337_v52  ;;  %v1353_v27 = vrot.slane %v1337_v52, %v3839_v36  ;;  %v2373_v31 = vcombine.low %v4153_v45, %v1669_v35  ;;  %v4174_v23 = vrot.slane %v4156_v57, %v3839_v36 }
 0x18a   : > { %v2038_v26 = vcombine.low %v2016_v25, %v2030_v24  ;;  %v2394_v19 = vrot.slane %v2372_v38, %v3839_v36  ;;  %v922_v34 = vsel %vm896_vm2, %v893_v0, %v708_v9  ;;  %v2403_v1 = vcombine.high %v2380_v63, %v2387_v59 }
 0x18b   : > { %v1367_v16 = vrot.slane %v1345_v28, %v3839_v36  ;;  %v1375_v41 = vcombine.high %v1353_v27, %v1353_v27  ;;  %v4166_v21 = vpop.permute.xlu0 %639  ;;  %v2401_v20 = vrot.slane %v2373_v31, %v3839_v36  ;;  %v771_v11 = vpop.permute.xlu1 %770  ;;  %v2041_v62 = vcombine.low %v1327_v8, %v1353_v27 }
 0x18c   : > { %2754 = vmatmul.mubr.bf16.gmra.mxu0 %v2038_v26  ;;  %v2402_v6 = vcombine.low %v2380_v63, %v2387_v59  ;;  %v2050_v15 = vrot.slane %v2040_v2, %v3839_v36  ;;  %v1640_v56 = vcombine.high %v1638_v22, %v1638_v22  ;;  %v951_v43 = vsel %vm925_vm3, %v922_v34, %v737_v46 }
 0x18d   : > { %v1377_v42 = vcombine.high %v1367_v16, %v1367_v16  ;;  %v2042_v58 = vcombine.low %v1367_v16, %v1375_v41  ;;  %v2057_v48 = vrot.slane %v2041_v62, %v3839_v36  ;;  %v2405_v33 = vcombine.high %v2394_v19, %v2401_v20 }
 0x18e   : > { %v2404_v47 = vcombine.low %v2394_v19, %v2401_v20  ;;  %v2419_v13 = vrot.slane %v2403_v1, %v3839_v36  ;;  %v2412_v7 = vrot.slane %v2402_v6, %v3839_v36  ;;  %v1654_v29 = vrot.slane %v1638_v22, %v3839_v36 }
 0x18f   : > { %v2043_v55 = vcombine.low %v1377_v42, %v4174_v23  ;;  %v4180_v51 = vpop.permute.xlu0 %695  ;;  %v800_v50 = vpop.permute.xlu1 %799  ;;  %v2064_v54 = vrot.slane %v2042_v58, %v3839_v36  ;;  %v2433_v5 = vrot.slane %v2405_v33, %v3839_v36  ;;  %v2073_v14 = vcombine.high %v2050_v15, %v2057_v48 }
 0x190   : > { %v2072_v3 = vcombine.low %v2050_v15, %v2057_v48  ;;  %v2426_v32 = vrot.slane %v2404_v47, %v3839_v36  ;;  %v980_v4 = vsel %vm954_vm4, %v951_v43, %v771_v11  ;;  %v1671_v35 = vcombine.high %v4153_v45, %v4153_v45 }
 0x191   : > { %v2071_v12 = vrot.slane %v2043_v55, %v3839_v36  ;;  %v2435_v40 = vcombine.low %v2419_v13, %v2433_v5  ;;  %v2089_v61 = vrot.slane %v2073_v14, %v3839_v36  ;;  %v1009_v30 = vsel %vm983_vm5, %v980_v4, %v800_v50 }
 0x192   : > { %v2434_v44 = vcombine.low %v2412_v7, %v2426_v32  ;;  %v2082_v37 = vrot.slane %v2072_v3, %v3839_v36  ;;  %v1668_v8 = vrot.slane %v1640_v56, %v3839_v36  ;;  %v1670_v38 = vcombine.high %v1654_v29, %v1654_v29 }
 0x193   : > { %v4188_v39 = vpop.permute.xlu0 %653  ;;  %v2075_v17 = vcombine.high %v2064_v54, %v2071_v12  ;;  %v2074_v18 = vcombine.low %v2064_v54, %v2071_v12  ;;  %v829_v10 = vpop.permute.xlu1 %828  ;;  %3119 = vmatprep.mubr.msk.bf16.mxu1 %vm867_vm1, %v2435_v40  ;;  %v2436_v2 = vcombine.low %v1671_v35, %v1654_v29  ;;  %v4380_v54 = vld [vmem:[#allocation3_spill] sm:$0xff]  ;;  %v1346_v29 = vcombine.high %v4156_v57, %v4156_v57 }
 0x194   : > { %v1038_v9 = vsel %vm1012_vm6, %v1009_v30, %v829_v10  ;;  %2802 = vmatmul.mubr.bf16.gmra.mxu1 %v2434_v44  ;;  %v2437_v25 = vcombine.low %v1668_v8, %v1670_v38  ;;  %v881_v12 = vsel %vm867_vm1, %v4380_v54, %v4166_v21  ;;  %v1376_v35 = vcombine.high %v4174_v23, %v4174_v23  ;;  %v4382_v38 = vld [vmem:[#allocation5_spill] sm:$0xff] }
 0x195   : > { %v2103_v52 = vrot.slane %v2075_v17, %v3839_v36  ;;  %v2096_v46 = vrot.slane %v2074_v18, %v3839_v36  ;;  %v2446_v20 = vrot.slane %v2436_v2, %v3839_v36  ;;  %v910_v3 = vsel %vm896_vm2, %v881_v12, %v4180_v51 }
 0x196   : > { %v2453_v58 = vrot.slane %v2437_v25, %v3839_v36  ;;  %v1374_v30 = vrot.slane %v1346_v29, %v3839_v36 }
 0x197   : > { %v863_v63 = vpop.permute.xlu0 %862  ;;  %v2105_v28 = vcombine.low %v2089_v61, %v2103_v52  ;;  %v2104_v27 = vcombine.low %v2082_v37, %v2096_v46  ;;  %v725_v24 = vpop.permute.xlu1 %724  ;;  %v4381_v52 = vld [vmem:[#allocation4_spill] sm:$0xff] }
 0x198   : > { %v1067_v59 = vsel %vm1041_vm7, %v1038_v9, %v863_v63  ;;  %v2469_v48 = vcombine.high %v2446_v20, %v2453_v58  ;;  %v2468_v6 = vcombine.low %v2446_v20, %v2453_v58  ;;  %v895_v37 = vsel %vm867_vm1, %v4381_v52, %v4188_v39 }
 0x199   : > { %v1672_v31 = vcombine.low %v1067_v59, %v3806_v53  ;;  %3114 = vmatprep.mubr.msk.bf16.mxu0 %vm867_vm1, %v2105_v28  ;;  %v1673_v56 = vcombine.high %v1067_v59, %v3806_v53  ;;  %v939_v53 = vsel %vm925_vm3, %v910_v3, %v725_v24 }
 0x19a   : > { %2762 = vmatmul.mubr.bf16.gmra.mxu0 %v2104_v27  ;;  %v2485_v47 = vrot.slane %v2469_v48, %v3839_v36  ;;  %v2478_v5 = vrot.slane %v2468_v6, %v3839_v36 }
 0x19b   : > { %v1680_v45 = vrot.slane %v1672_v31, %v3839_v36  ;;  %v759_v16 = vpop.permute.xlu0 %758  ;;  %v710_v41 = vpop.permute.xlu1 %709  ;;  %v1687_v32 = vrot.slane %v1673_v56, %v3839_v36 }
 0x19c   : > { %v968_v21 = vsel %vm954_vm4, %v939_v53, %v759_v16  ;;  %v924_v9 = vsel %vm896_vm2, %v895_v37, %v710_v41  ;;  %v2106_v16 = vcombine.low %v1374_v30, %v1376_v35 }
 0x19d   : > { %v1688_v22 = vcombine.high %v1680_v45, %v1680_v45  ;;  %v1696_v0 = vrot.slane %v1680_v45, %v3839_v36  ;;  %v1689_v61 = vcombine.high %v1687_v32, %v1687_v32  ;;  %v1703_v41 = vrot.slane %v1687_v32, %v3839_v36 }
 0x19e   : > { %v2116_v6 = vrot.slane %v2106_v16, %v3839_v36 }
 0x19f   : > { %v1710_v11 = vrot.slane %v1688_v22, %v3839_v36  ;;  %v788_v42 = vpop.permute.xlu0 %787  ;;  %v739_v62 = vpop.permute.xlu1 %738  ;;  %v1717_v39 = vrot.slane %v1689_v61, %v3839_v36 }
 0x1a0   : > { %v997_v4 = vsel %vm983_vm5, %v968_v21, %v788_v42  ;;  %v953_v28 = vsel %vm925_vm3, %v924_v9, %v739_v62 }
 0x1a1   : > { %v2438_v26 = vcombine.low %v1696_v0, %v1710_v11  ;;  %v3100_v19 = vcombine.high %v1696_v0, %v1710_v11  ;;  %v2502_v58 = vcombine.low %v1703_v41, %v1717_v39 }
 0x1a3   : > { %v2460_v34 = vrot.slane %v2438_v26, %v3839_v36  ;;  %v2467_v1 = vrot.slane %v3100_v19, %v3839_v36  ;;  %v817_v55 = vpop.permute.xlu0 %816  ;;  %v773_v15 = vpop.permute.xlu1 %772 }
 0x1a4   : > { %v1026_v40 = vsel %vm1012_vm6, %v997_v4, %v817_v55  ;;  %v982_v8 = vsel %vm954_vm4, %v953_v28, %v773_v15 }
 0x1a5   : > { %v2471_v50 = vcombine.high %v2460_v34, %v2467_v1  ;;  %v2470_v33 = vcombine.low %v2460_v34, %v2467_v1 }
 0x1a7   : > { %v802_v43 = vpop.permute.xlu0 %801  ;;  %v2499_v13 = vrot.slane %v2471_v50, %v3839_v36  ;;  %v2492_v14 = vrot.slane %v2470_v33, %v3839_v36  ;;  %v642_v7 = vpop.permute.xlu1 %641 }
 0x1a8   : > { %v883_v31 = vsel %vm867_vm1, %v4382_v38, %v642_v7  ;;  %v1011_v23 = vsel %vm983_vm5, %v982_v8, %v802_v43 }
 0x1a9   : > { %v2501_v17 = vcombine.low %v2485_v47, %v2499_v13  ;;  %v2500_v18 = vcombine.low %v2478_v5, %v2492_v14  ;;  %v1719_v13 = vcombine.high %v1703_v41, %v1703_v41  ;;  %v2512_v5 = vrot.slane %v2502_v58, %v3839_v36 }
 0x1ab   : > { %3120 = vmatprep.mubr.msk.bf16.mxu1 %vm867_vm1, %v2501_v17  ;;  %v698_v10 = vpop.permute.xlu0 %697  ;;  %v851_v51 = vpop.permute.xlu1 %850 }
 0x1ac   : > { %2810 = vmatmul.mubr.bf16.gmra.mxu1 %v2500_v18  ;;  %v1055_v44 = vsel %vm1041_vm7, %v1026_v40, %v851_v51  ;;  %v912_v25 = vsel %vm896_vm2, %v883_v31, %v698_v10 }
 0x1ad   : > { %v1378_v46 = vcombine.low %v1055_v44, %v3494_v49  ;;  %v1379_v57 = vcombine.high %v1055_v44, %v3494_v49  ;;  %v866_v49 = vrot.slane %v3812_v60, 1 }
 0x1af   : > { %v727_v63 = vpop.permute.xlu0 %726  ;;  %v1386_v27 = vrot.slane %v1378_v46, %v3839_v36  ;;  %v1393_v24 = vrot.slane %v1379_v57, %v3839_v36  ;;  %v831_v59 = vpop.permute.xlu1 %830 }
 0x1b0   : > { %v1040_v22 = vsel %vm1012_vm6, %v1011_v23, %v831_v59  ;;  %v941_v26 = vsel %vm925_vm3, %v912_v25, %v727_v63  ;;  %v4383_v63 = vld [vmem:[#allocation2_spill] sm:$0xff] }
 0x1b1   : > { %v1394_v2 = vcombine.high %v1386_v27, %v1386_v27  ;;  %v1395_v45 = vcombine.high %v1393_v24, %v1393_v24  ;;  %v1402_v0 = vrot.slane %v1386_v27, %v3839_v36  ;;  %v4256_v11 = vrot.slane %v1393_v24, %v3839_v36 }
 0x1b3   : > { %v761_v20 = vpop.permute.xlu0 %760  ;;  %v1416_v60 = vrot.slane %v1394_v2, %v3839_v36  ;;  %v1423_v42 = vrot.slane %v1395_v45, %v3839_v36  ;;  %v865_v62 = vpop.permute.xlu1 %864  ;;  %v1425_v8 = vcombine.high %v4256_v11, %v4256_v11 }
 0x1b4   : > { %v1069_v19 = vsel %vm1041_vm7, %v1040_v22, %v865_v62  ;;  %v970_v56 = vsel %vm954_vm4, %v941_v26, %v761_v20 }
 0x1b5   : > { %v2107_v34 = vcombine.low %v1402_v0, %v1416_v60  ;;  %v3097_v1 = vcombine.high %v1402_v0, %v1416_v60  ;;  %v2109_v55 = vcombine.low %v4256_v11, %v1423_v42  ;;  %v1721_v48 = vcombine.low %v1069_v19, %v866_v49 }
 0x1b6   : > { %v1722_v15 = vcombine.high %v1069_v19, %v866_v49 }
 0x1b7   : > { %v819_v50 = vpop.permute.xlu0 %818  ;;  %v2123_v33 = vrot.slane %v2107_v34, %v3839_v36  ;;  %v2130_v54 = vrot.slane %v3097_v1, %v3839_v36  ;;  %v2137_v12 = vrot.slane %v2109_v55, %v3839_v36  ;;  %v1729_v43 = vrot.slane %v1721_v48, %v3839_v36  ;;  %v790_v47 = vpop.permute.xlu1 %789 }
 0x1b8   : > { %v1736_v14 = vrot.slane %v1722_v15, %v3839_v36  ;;  %v999_v3 = vsel %vm983_vm5, %v970_v56, %v790_v47 }
 0x1b9   : > { %v1737_v7 = vcombine.high %v1729_v43, %v1729_v43  ;;  %v1745_v53 = vrot.slane %v1729_v43, %v3839_v36  ;;  %v1028_v32 = vsel %vm1012_vm6, %v999_v3, %v819_v50  ;;  %v2139_v17 = vcombine.high %v2116_v6, %v2123_v33 }
 0x1ba   : > { %v1738_v18 = vcombine.high %v1736_v14, %v1736_v14  ;;  %v1752_v21 = vrot.slane %v1736_v14, %v3839_v36  ;;  %v2141_v29 = vcombine.high %v2130_v54, %v2137_v12  ;;  %v2138_v4 = vcombine.low %v2116_v6, %v2123_v33 }
 0x1bb   : > { %v1759_v10 = vrot.slane %v1737_v7, %v3839_v36  ;;  %v1767_v40 = vcombine.high %v1745_v53, %v1745_v53  ;;  %v2503_v51 = vcombine.low %v1719_v13, %v1745_v53  ;;  %v853_v61 = vpop.permute.xlu1 %852  ;;  %v2155_v44 = vrot.slane %v2139_v17, %v3839_v36 }
 0x1bc   : > { %v1766_v52 = vrot.slane %v1738_v18, %v3839_v36  ;;  %v1768_v37 = vcombine.high %v1752_v21, %v1752_v21  ;;  %v1057_v46 = vsel %vm1041_vm7, %v1028_v32, %v853_v61  ;;  %v2169_v57 = vrot.slane %v2141_v29, %v3839_v36 }
 0x1bd   : > { %v1769_v30 = vcombine.high %v1759_v10, %v1759_v10  ;;  %v2504_v35 = vcombine.low %v1759_v10, %v1767_v40  ;;  %v2519_v9 = vrot.slane %v2503_v51, %v3839_v36  ;;  %v1427_v28 = vcombine.low %v1057_v46, %v4383_v63 }
 0x1be   : > { %v2568_v27 = vcombine.low %v1766_v52, %v1768_v37  ;;  %v1428_v24 = vcombine.high %v1057_v46, %v4383_v63  ;;  %v2171_v59 = vcombine.low %v2155_v44, %v2169_v57  ;;  %v2140_v39 = vcombine.low %v2130_v54, %v2137_v12  ;;  %v4317_v52 = vld [vmem:[%s4369_s3] ss:$0 sm:$0xff] }
 0x1bf   : > { %v2505_v49 = vcombine.low %v1769_v30, %v1752_v21  ;;  %v1435_v38 = vrot.slane %v1427_v28, %v3839_v36  ;;  %v2148_v31 = vrot.slane %v2138_v4, %v3839_v36  ;;  %v2526_v23 = vrot.slane %v2504_v35, %v3839_v36 }
 0x1c0   : > { %v1442_v2 = vrot.slane %v1428_v24, %v3839_v36  ;;  %3115 = vmatprep.mubr.msk.bf16.mxu0 %vm867_vm1, %v2171_v59  ;;  %v2162_v45 = vrot.slane %v2140_v39, %v3839_v36  ;;  %v2535_v16 = vcombine.high %v2512_v5, %v2519_v9  ;;  %v2534_v20 = vcombine.low %v2512_v5, %v2519_v9 }
 0x1c1   : > { %v2533_v41 = vrot.slane %v2505_v49, %v3839_v36  ;;  %v1443_v25 = vcombine.high %v1435_v38, %v1435_v38  ;;  %v1451_v22 = vrot.slane %v1435_v38, %v3839_v36  ;;  %v2575_v42 = vrot.slane %v2568_v27, %v3839_v36 }
 0x1c2   : > { %v1444_v0 = vcombine.high %v1442_v2, %v1442_v2  ;;  %v1458_v11 = vrot.slane %v1442_v2, %v3839_v36  ;;  %v2170_v60 = vcombine.low %v2148_v31, %v2162_v45  ;;  %v2551_v15 = vrot.slane %v2535_v16, %v3839_v36 }
 0x1c3   : > { %v1465_v62 = vrot.slane %v1443_v25, %v3839_v36  ;;  %v1473_v58 = vcombine.high %v1451_v22, %v1451_v22  ;;  %v2172_v26 = vcombine.low %v1425_v8, %v1451_v22  ;;  %v2537_v19 = vcombine.high %v2526_v23, %v2533_v41 }
 0x1c4   : > { %v1472_v34 = vrot.slane %v1444_v0, %v3839_v36  ;;  %v1474_v1 = vcombine.high %v1458_v11, %v1458_v11  ;;  %2770 = vmatmul.mubr.bf16.gmra.mxu0 %v2170_v60  ;;  %v2536_v55 = vcombine.low %v2526_v23, %v2533_v41  ;;  %v2544_v33 = vrot.slane %v2534_v20, %v3839_v36 }
 0x1c5   : > { %v1475_v48 = vcombine.high %v1465_v62, %v1465_v62  ;;  %v2173_v6 = vcombine.low %v1465_v62, %v1473_v58  ;;  %v2565_v56 = vrot.slane %v2537_v19, %v3839_v36  ;;  %v2576_v12 = vcombine.high %v2575_v42, %v2575_v42 }
 0x1c6   : > { %v2175_v50 = vcombine.low %v1472_v34, %v1474_v1  ;;  %v2558_v54 = vrot.slane %v2536_v55, %v3839_v36  ;;  %v2182_v47 = vrot.slane %v2172_v26, %v3839_v36  ;;  %v2583_v44 = vrot.slane %v2575_v42, %v3839_v36 }
 0x1c7   : > { %v2174_v43 = vcombine.low %v1475_v48, %v1458_v11  ;;  %v2189_v13 = vrot.slane %v2173_v6, %v3839_v36  ;;  %v2567_v5 = vcombine.low %v2551_v15, %v2565_v56  ;;  %v2590_v53 = vrot.slane %v2576_v12, %v3839_v36 }
 0x1c8   : > { %v2203_v14 = vrot.slane %v2175_v50, %v3839_v36  ;;  %v2566_v3 = vcombine.low %v2544_v33, %v2558_v54 }
 0x1c9   : > { %v2196_v7 = vrot.slane %v2174_v43, %v3839_v36  ;;  %3121 = vmatprep.mubr.msk.bf16.mxu1 %vm867_vm1, %v2567_v5  ;;  %v2205_v32 = vcombine.high %v2182_v47, %v2189_v13  ;;  %v2204_v17 = vcombine.low %v2182_v47, %v2189_v13 }
 0x1ca   : > { %2818 = vmatmul.mubr.bf16.gmra.mxu1 %v2566_v3 }
 0x1cb   : > { %3122 = vmatprep.mubr.msk.bf16.mxu1 %vm867_vm1, %v2590_v53  ;;  %v2207_v18 = vcombine.high %v2196_v7, %v2203_v14  ;;  %v2206_v21 = vcombine.low %v2196_v7, %v2203_v14  ;;  %v2221_v29 = vrot.slane %v2205_v32, %v3839_v36  ;;  %v2214_v10 = vrot.slane %v2204_v17, %v3839_v36 }
 0x1cd   : > { %v2235_v4 = vrot.slane %v2207_v18, %v3839_v36  ;;  %v2228_v40 = vrot.slane %v2206_v21, %v3839_v36 }
 0x1cf   : > { %v2237_v51 = vcombine.low %v2221_v29, %v2235_v4  ;;  %v2236_v61 = vcombine.low %v2214_v10, %v2228_v40 }
 0x1d1   : > { %3116 = vmatprep.mubr.msk.bf16.mxu0 %vm867_vm1, %v2237_v51 }
 0x1d2   : > { %2778 = vmatmul.mubr.bf16.gmra.mxu0 %v2236_v61  ;;  %2826 = vmatmul.mubr.bf16.gmra.mxu1 %v2583_v44 }
 0x21c   : > { %v2731_v37 = vpop.f32.mrf.mxu0 }
 0x21d   : > { %v2732_v57 = vadd.f32 %v4317_v52, %v2731_v37 }
 0x21e   : > { %v2733_v46 = vpop.f32.mrf.mxu0 }
 0x21f   : > { %v2833_v63 = vmax.f32 %v2732_v57, 0.0 }
 0x220   : > { %v2734_v30 = vpop.f32.mrf.mxu0 }
 0x221   : > { %v2735_v35 = vadd.f32 %v4317_v52, %v2734_v30 }
 0x222   : > { %v2736_v9 = vpop.f32.mrf.mxu0 }
 0x223   : > { %v2834_v36 = vmax.f32 %v2735_v35, 0.0 }
 0x225   : > { %v3180_v28 = vpack.c.bf16 %v2834_v36, %v2833_v63 }
 0x227   : > { %3181 = vst [vmem:[%s4325_s5] sm:$0xff] %v3180_v28  }
 0x230   : > { %v2739_v27 = vpop.f32.mrf.mxu0 }
 0x231   : > { %v2740_v59 = vadd.f32 %v4317_v52, %v2739_v27 }
 0x232   : > { %v2741_v24 = vpop.f32.mrf.mxu0 }
 0x233   : > { %v2835_v38 = vmax.f32 %v2740_v59, 0.0 }
 0x234   : > { %v2742_v39 = vpop.f32.mrf.mxu0 }
 0x235   : > { %v2743_v8 = vadd.f32 %v4317_v52, %v2742_v39 }
 0x236   : > { %v2744_v49 = vpop.f32.mrf.mxu0 }
 0x237   : > { %v2836_v31 = vmax.f32 %v2743_v8, 0.0 }
 0x238   : > { %v2747_v23 = vpop.f32.mrf.mxu0 }
 0x239   : > { %v3185_v2 = vpack.c.bf16 %v2836_v31, %v2835_v38  ;;  %v2748_v41 = vadd.f32 %v4317_v52, %v2747_v23 }
 0x23a   : > { %v2787_v45 = vpop.f32.mrf.mxu1  ;;  %v2749_v16 = vpop.f32.mrf.mxu0 }
 0x23b   : > { %3237 = vst [vmem:[%s4325_s5 + $0x8] sm:$0xff] %v3185_v2   ;;  %v2788_v20 = vadd.f32 %v4317_v52, %v2787_v45  ;;  %v2837_v42 = vmax.f32 %v2748_v41, 0.0 }
 0x23c   : > { %v2789_v25 = vpop.f32.mrf.mxu1  ;;  %v2750_v22 = vpop.f32.mrf.mxu0 }
 0x23d   : > { %v2751_v0 = vadd.f32 %v4317_v52, %v2750_v22  ;;  %v2847_v19 = vmax.f32 %v2788_v20, 0.0 }
 0x23e   : > { %v2790_v11 = vpop.f32.mrf.mxu1  ;;  %v2752_v60 = vpop.f32.mrf.mxu0 }
 0x23f   : > { %v2838_v62 = vmax.f32 %v2751_v0, 0.0  ;;  %v2791_v58 = vadd.f32 %v4317_v52, %v2790_v11 }
 0x240   : > { %v2792_v26 = vpop.f32.mrf.mxu1 }
 0x241   : > { %v3190_v34 = vpack.c.bf16 %v2838_v62, %v2837_v42  ;;  %v2848_v1 = vmax.f32 %v2791_v58, 0.0 }
 0x242   : > { %v2795_v55 = vpop.f32.mrf.mxu1 }
 0x243   : > { %3238 = vst [vmem:[%s4325_s5 + $0x10] sm:$0xff] %v3190_v34   ;;  %v3215_v48 = vpack.c.bf16 %v2848_v1, %v2847_v19  ;;  %v2796_v15 = vadd.f32 %v4317_v52, %v2795_v55 }
 0x244   : > { %v2797_v6 = vpop.f32.mrf.mxu1 }
 0x245   : > { %3243 = vst [vmem:[%s4325_s5 + $0x38] sm:$0xff] %v3215_v48   ;;  %v2849_v54 = vmax.f32 %v2796_v15, 0.0 }
 0x246   : > { %v2798_v56 = vpop.f32.mrf.mxu1 }
 0x247   : > { %v2799_v50 = vadd.f32 %v4317_v52, %v2798_v56 }
 0x248   : > { %v2800_v33 = vpop.f32.mrf.mxu1 }
 0x249   : > { %v2850_v12 = vmax.f32 %v2799_v50, 0.0 }
 0x24b   : > { %v3220_v43 = vpack.c.bf16 %v2850_v12, %v2849_v54 }
 0x24c   : > { %v2755_v47 = vpop.f32.mrf.mxu0 }
 0x24d   : > { %3244 = vst [vmem:[%s4325_s5 + $0x40] sm:$0xff] %v3220_v43   ;;  %v2756_v5 = vadd.f32 %v4317_v52, %v2755_v47 }
 0x24e   : > { %v2757_v13 = vpop.f32.mrf.mxu0 }
 0x24f   : > { %v2839_v53 = vmax.f32 %v2756_v5, 0.0 }
 0x250   : > { %v2758_v14 = vpop.f32.mrf.mxu0 }
 0x251   : > { %v2759_v3 = vadd.f32 %v4317_v52, %v2758_v14 }
 0x252   : > { %v2760_v7 = vpop.f32.mrf.mxu0 }
 0x253   : > { %v2840_v32 = vmax.f32 %v2759_v3, 0.0 }
 0x254   : > { %v2803_v17 = vpop.f32.mrf.mxu1 }
 0x255   : > { %v3195_v18 = vpack.c.bf16 %v2840_v32, %v2839_v53  ;;  %v2804_v29 = vadd.f32 %v4317_v52, %v2803_v17 }
 0x256   : > { %v2805_v21 = vpop.f32.mrf.mxu1 }
 0x257   : > { %3239 = vst [vmem:[%s4325_s5 + $0x18] sm:$0xff] %v3195_v18   ;;  %v2851_v37 = vmax.f32 %v2804_v29, 0.0 }
 0x258   : > { %v2806_v10 = vpop.f32.mrf.mxu1 }
 0x259   : > { %v2807_v40 = vadd.f32 %v4317_v52, %v2806_v10 }
 0x25a   : > { %v2763_v4 = vpop.f32.mrf.mxu0  ;;  %v2808_v44 = vpop.f32.mrf.mxu1 }
 0x25b   : > { %v2764_v61 = vadd.f32 %v4317_v52, %v2763_v4  ;;  %v2852_v46 = vmax.f32 %v2807_v40, 0.0 }
 0x25c   : > { %v2765_v51 = vpop.f32.mrf.mxu0 }
 0x25d   : > { %v3225_v35 = vpack.c.bf16 %v2852_v46, %v2851_v37  ;;  %v2841_v63 = vmax.f32 %v2764_v61, 0.0 }
 0x25e   : > { %v2766_v57 = vpop.f32.mrf.mxu0 }
 0x25f   : > { %v2767_v30 = vadd.f32 %v4317_v52, %v2766_v57  ;;  %3245 = vst [vmem:[%s4325_s5 + $0x48] sm:$0xff] %v3225_v35  }
 0x260   : > { %v2768_v9 = vpop.f32.mrf.mxu0 }
 0x261   : > { %v2842_v36 = vmax.f32 %v2767_v30, 0.0 }
 0x263   : > { %v3200_v28 = vpack.c.bf16 %v2842_v36, %v2841_v63 }
 0x265   : > { %3240 = vst [vmem:[%s4325_s5 + $0x20] sm:$0xff] %v3200_v28  }
 0x26c   : > { %v2811_v27 = vpop.f32.mrf.mxu1 }
 0x26d   : > { %v2812_v59 = vadd.f32 %v4317_v52, %v2811_v27 }
 0x26e   : > { %v2813_v24 = vpop.f32.mrf.mxu1 }
 0x26f   : > { %v2853_v38 = vmax.f32 %v2812_v59, 0.0 }
 0x270   : > { %v2814_v39 = vpop.f32.mrf.mxu1 }
 0x271   : > { %v2815_v8 = vadd.f32 %v4317_v52, %v2814_v39 }
 0x272   : > { %v2816_v49 = vpop.f32.mrf.mxu1 }
 0x273   : > { %v2854_v31 = vmax.f32 %v2815_v8, 0.0 }
 0x275   : > { %v3230_v23 = vpack.c.bf16 %v2854_v31, %v2853_v38 }
 0x277   : > { %3246 = vst [vmem:[%s4325_s5 + $0x50] sm:$0xff] %v3230_v23  }
 0x284   : > { %v2771_v2 = vpop.f32.mrf.mxu0 }
 0x285   : > { %v2772_v16 = vadd.f32 %v4317_v52, %v2771_v2 }
 0x286   : > { %v2773_v45 = vpop.f32.mrf.mxu0 }
 0x287   : > { %v2843_v0 = vmax.f32 %v2772_v16, 0.0 }
 0x288   : > { %v2774_v41 = vpop.f32.mrf.mxu0 }
 0x289   : > { %v2775_v25 = vadd.f32 %v4317_v52, %v2774_v41 }
 0x28a   : > { %v2776_v22 = vpop.f32.mrf.mxu0  ;;  %v2819_v20 = vpop.f32.mrf.mxu1 }
 0x28b   : > { %v2844_v11 = vmax.f32 %v2775_v25, 0.0  ;;  %v2820_v62 = vadd.f32 %v4317_v52, %v2819_v20 }
 0x28c   : > { %v2821_v60 = vpop.f32.mrf.mxu1 }
 0x28d   : > { %v3205_v42 = vpack.c.bf16 %v2844_v11, %v2843_v0  ;;  %v2855_v34 = vmax.f32 %v2820_v62, 0.0 }
 0x28e   : > { %v2822_v58 = vpop.f32.mrf.mxu1 }
 0x28f   : > { %3241 = vst [vmem:[%s4325_s5 + $0x28] sm:$0xff] %v3205_v42   ;;  %v2823_v26 = vadd.f32 %v4317_v52, %v2822_v58 }
 0x290   : > { %v2824_v19 = vpop.f32.mrf.mxu1 }
 0x291   : > { %v2856_v1 = vmax.f32 %v2823_v26, 0.0 }
 0x292   : > { %v2779_v55 = vpop.f32.mrf.mxu0  ;;  %v2827_v48 = vpop.f32.mrf.mxu1 }
 0x293   : > { %v3235_v6 = vpack.c.bf16 %v2856_v1, %v2855_v34  ;;  %v2828_v15 = vadd.f32 %v4317_v52, %v2827_v48  ;;  %v2780_v33 = vadd.f32 %v4317_v52, %v2779_v55 }
 0x294   : > { %v2781_v56 = vpop.f32.mrf.mxu0  ;;  %v2829_v50 = vpop.f32.mrf.mxu1 }
 0x295   : > { %3247 = vst [vmem:[%s4325_s5 + $0x58] sm:$0xff] %v3235_v6   ;;  %v2857_v54 = vmax.f32 %v2828_v15, 0.0  ;;  %v2845_v3 = vmax.f32 %v2780_v33, 0.0 }
 0x296   : > { %v2782_v12 = vpop.f32.mrf.mxu0  ;;  %v2830_v43 = vpop.f32.mrf.mxu1 }
 0x297   : > { %v3176_v47 = vpack.c.bf16 %v2857_v54, %v2857_v54  ;;  %v2783_v13 = vadd.f32 %v4317_v52, %v2782_v12 }
 0x298   : > { %v2784_v5 = vpop.f32.mrf.mxu0  ;;  %v2831_v14 = vpop.f32.mrf.mxu1 }
 0x299   : > { %2983 = vst [vmem:[%s4325_s5 + $0x60] sm:$0x3] %v3176_v47  ;;  %v2846_v7 = vmax.f32 %v2783_v13, 0.0 }
 0x29b   : > { %v3210_v53 = vpack.c.bf16 %v2846_v7, %v2845_v3 }
 0x29d   : > { %3242 = vst [vmem:[%s4325_s5 + $0x30] sm:$0xff] %v3210_v53  }
 0x29e PF: > { %s14_s15 = sadd.s32 1, %s3332_s15  }
 0x29f   : > { %p11_p4 = scmp.ge.s32.totalorder %s14_s15, 4  }
 0x2a1   :  { %13 = sbr.rel (!%p11_p4) target bundleno = 1 (0x1), region = 69 }

</bundles_post_ra>
